<compile_context>
chip_gen: v6e
topology: v6e:2x2x1
jax: 0.10.0
libtpu: 0.0.40
codegen_flags: <defaults>
</compile_context>

<pallas_src>
import math
import functools

import jax
import jax.numpy as jnp
from jax.experimental import pallas as pl
from jax.experimental.pallas import tpu as pltpu


def _round_up(a, b):
    return (a + b - 1) // b * b


# ----------------------------------------------------------------------------
# Fused kernel: lambda positional encoding + conv(1x3)+ReLU+avgpool(W).
# All operands are laid out with NH on the lane (last) axis.
# ----------------------------------------------------------------------------
def _fused_embed_kernel(c_ref, lam_ref, div_ref, phase_ref, x_ref, w_ref, b_ref,
                        lam_o_ref, feat_o_ref, *, width, chans):
    # c_ref:     SMEM (1,)          learnable scalar C
    # lam_ref:   (1, T)             lambdas for this NH tile
    # div_ref:   (E, 1)             div_term, duplicated per sin/cos pair
    # phase_ref: (E, 1)             0 for even channels, pi/2 for odd channels
    # x_ref:     ((W+2)*C, T)       W-zero-padded input, row = wp*C + c
    # w_ref:     (E, 3*C)           conv weight, col = kw*C + c
    # b_ref:     (E, 1)             conv bias
    # lam_o_ref / feat_o_ref: (E, T)  transposed, lane-dense outputs
    c = c_ref[0]

    # --- adaptive lambda encoding: sin(lambda*C*div + phase) (single EUP sin) ---
    arg = div_ref[...] * (lam_ref[...] * c) + phase_ref[...]           # (E, T)
    lam_o_ref[...] = jnp.sin(arg)

    # --- conv(1x3) + ReLU + mean over W as W sliding-window MXU matmuls ---
    wmat = w_ref[...]                                                  # (E, 3C), resident
    bias = b_ref[...]                                                  # (E, 1); broadcast per
    #                                                                  # iter keeps live vregs low
    acc = jnp.zeros(feat_o_ref.shape, jnp.float32)                     # (E, T)
    for w in range(width):                                             # fully unrolled
        x_win = x_ref[w * chans:(w + 3) * chans, :]                    # (3C, T) from VMEM
        y = jnp.dot(wmat, x_win, preferred_element_type=jnp.float32)   # (E, T) on MXU
        acc = acc + jnp.maximum(y + bias, 0.0)                         # bias + ReLU + pool-sum
    feat_o_ref[...] = acc * (1.0 / width)                              # AdaptiveAvgPool2d((1,1))


# ----------------------------------------------------------------------------
# Wrapper: layout plumbing + pallas_call
# ----------------------------------------------------------------------------
def embedding_strategy_4chans_forward(params, x, lambdas, deltas=None, masks=None,
                                      original_lengths=None, *, embed_dim,
                                      max_tile_nh=512):
    # deltas / masks / original_lengths are unused by the 'cnn' strategy (API parity).
    N, C, H, W = x.shape
    E = embed_dim
    NH = N * H

    # NH tile: multiple of 128 (lane-dense blocks / aligned stores), capped at max_tile_nh.
    tile_nh = min(max_tile_nh, _round_up(NH, 128))
    NH_pad = _round_up(NH, tile_nh)

    # ---- lambda-encoding operands (E on sublanes, NH on lanes) ----
    div_term = jnp.exp(
        jnp.arange(0, E, 2, dtype=jnp.float32) * (-math.log(10000.0) / E))
    div_col = jnp.repeat(div_term, 2).reshape(E, 1)                     # div[2i] == div[2i+1]
    phase_col = ((jnp.arange(E) % 2).astype(jnp.float32) * (math.pi / 2)).reshape(E, 1)
    lam_row = lambdas.reshape(1, NH).astype(jnp.float32)
    lam_row = jnp.pad(lam_row, ((0, 0), (0, NH_pad - NH)))
    c_arr = jnp.asarray(params["C"], jnp.float32).reshape(1)

    # ---- feature-encoder operands ----
    # x [N,C,H,W] -> zero-pad W by (1,1) -> [(W+2)*C, NH]  (row = wp*C + c, col = n*H + h)
    xp = jnp.pad(x, ((0, 0), (0, 0), (0, 0), (1, 1))).astype(jnp.float32)
    xw2d = jnp.transpose(xp, (3, 1, 0, 2)).reshape((W + 2) * C, NH)
    xw2d = jnp.pad(xw2d, ((0, 0), (0, NH_pad - NH)))
    # conv_w [E, C, 1, 3] -> [E, kw*C + c]
    wmat = jnp.transpose(params["conv_w"][:, :, 0, :], (0, 2, 1)).reshape(E, 3 * C)
    wmat = wmat.astype(jnp.float32)
    bias_col = params["conv_b"].reshape(E, 1).astype(jnp.float32)

    kern = functools.partial(_fused_embed_kernel, width=W, chans=C)
    lam_t, feat_t = pl.pallas_call(
        kern,
        out_shape=(jax.ShapeDtypeStruct((E, NH_pad), jnp.float32),
                   jax.ShapeDtypeStruct((E, NH_pad), jnp.float32)),
        grid=(NH_pad // tile_nh,),
        in_specs=[
            pl.BlockSpec(memory_space=pltpu.MemorySpace.SMEM),          # C (learnable scalar)
            pl.BlockSpec((1, tile_nh), lambda i: (0, i)),               # lambdas
            pl.BlockSpec((E, 1), lambda i: (0, 0)),                     # div_term (resident)
            pl.BlockSpec((E, 1), lambda i: (0, 0)),                     # phase    (resident)
            pl.BlockSpec(((W + 2) * C, tile_nh), lambda i: (0, i)),     # x, W-padded
            pl.BlockSpec((E, 3 * C), lambda i: (0, 0)),                 # conv weight (resident)
            pl.BlockSpec((E, 1), lambda i: (0, 0)),                     # conv bias   (resident)
        ],
        out_specs=(pl.BlockSpec((E, tile_nh), lambda i: (0, i)),
                   pl.BlockSpec((E, tile_nh), lambda i: (0, i))),
        compiler_params=pltpu.CompilerParams(dimension_semantics=("parallel",)),
    )(c_arr, lam_row, div_col, phase_col, xw2d, wmat, bias_col)

    # Transposed, padded outputs -> [N, H, E]
    lambda_emb = lam_t[:, :NH].T.reshape(N, H, E)
    feat_emb = feat_t[:, :NH].T.reshape(N, H, E)
    return lambda_emb, feat_emb


# ----------------------------------------------------------------------------
# Module parameters (matching EmbeddingStrategy4Chans('cnn'))
# ----------------------------------------------------------------------------
def init_params(key, embed_dim, in_chans=4):
    kw, kb = jax.random.split(key)
    fan_in = in_chans * 1 * 3
    bound = 1.0 / math.sqrt(fan_in)                                     # PyTorch Conv2d default
    conv_w = jax.random.uniform(kw, (embed_dim, in_chans, 1, 3), jnp.float32, -bound, bound)
    conv_b = jax.random.uniform(kb, (embed_dim,), jnp.float32, -bound, bound)
    C = jnp.float32(100.0)                                              # AdaptiveLambdaEncoding init_C
    return {"conv_w": conv_w, "conv_b": conv_b, "C": C}


# ----------------------------------------------------------------------------
# Pure-JAX reference (correctness check only)
# ----------------------------------------------------------------------------
def _reference(params, x, lambdas, embed_dim):
    div_term = jnp.exp(
        jnp.arange(0, embed_dim, 2, dtype=jnp.float32) * (-math.log(10000.0) / embed_dim))
    arg = (lambdas[..., None] * params["C"]) * div_term[None, None, :]
    pe = jnp.zeros(lambdas.shape + (embed_dim,), jnp.float32)
    pe = pe.at[..., 0::2].set(jnp.sin(arg))
    pe = pe.at[..., 1::2].set(jnp.cos(arg))

    N, C, H, W = x.shape
    xr = jnp.transpose(x, (0, 2, 1, 3)).reshape(N * H, C, 1, W)
    y = jax.lax.conv_general_dilated(
        xr, params["conv_w"], window_strides=(1, 1), padding=((0, 0), (1, 1)),
        dimension_numbers=("NCHW", "OIHW", "NCHW"))
    y = jnp.maximum(y + params["conv_b"][None, :, None, None], 0.0)
    feat = jnp.mean(y, axis=(2, 3)).reshape(N, H, -1)
    return pe, feat


if __name__ == "__main__":
    # Small shapes consistent with the module: x [N, 4, H, W], lambdas [N, H]
    N, C, H, W = 2, 4, 16, 16
    embed_dim = 32

    key = jax.random.PRNGKey(0)
    kx, kl, kp = jax.random.split(key, 3)
    x = jax.random.normal(kx, (N, C, H, W), dtype=jnp.float32)
    lambdas = jax.random.uniform(kl, (N, H), dtype=jnp.float32)          # lambda in [0, 1]
    params = init_params(kp, embed_dim, in_chans=C)

    lambda_emb, feat_emb = embedding_strategy_4chans_forward(
        params, x, lambdas, embed_dim=embed_dim)
    jax.block_until_ready((lambda_emb, feat_emb))

    ref_lambda, ref_feat = _reference(params, x, lambdas, embed_dim)
    assert lambda_emb.shape == (N, H, embed_dim)
    assert feat_emb.shape == (N, H, embed_dim)
    assert jnp.allclose(lambda_emb, ref_lambda, atol=5e-4, rtol=5e-4)
    assert jnp.allclose(feat_emb, ref_feat, atol=5e-4, rtol=5e-4)

    print("KERNEL_OK")
</pallas_src>

<mosaic_0001>
module attributes {stable_mosaic.version = 11 : i64} {
  func.func @_fused_embed_kernel(%arg0: i32, %arg1: memref<1xf32, #tpu.memory_space<smem>>, %arg2: memref<1x128xf32, #tpu.memory_space<vmem>>, %arg3: memref<32x1xf32, #tpu.memory_space<vmem>>, %arg4: memref<32x1xf32, #tpu.memory_space<vmem>>, %arg5: memref<72x128xf32, #tpu.memory_space<vmem>>, %arg6: memref<32x12xf32, #tpu.memory_space<vmem>>, %arg7: memref<32x1xf32, #tpu.memory_space<vmem>>, %arg8: memref<32x128xf32, #tpu.memory_space<vmem>>, %arg9: memref<32x128xf32, #tpu.memory_space<vmem>>) attributes {dimension_semantics = [#tpu.dimension_semantics<parallel>], iteration_bounds = array<i64: 1>, scalar_prefetch = 0 : i64, scratch_operands = 0 : i64, tpu.core_type = #tpu.core_type<tc>, window_params = [{transform_indices = @transform_0, window_bounds = array<i64: 1>}, {transform_indices = @transform_1, window_bounds = array<i64: 1, 128>}, {pipeline_mode = #tpu.pipeline_mode<synchronous>, transform_indices = @transform_2, window_bounds = array<i64: 32, 1>}, {pipeline_mode = #tpu.pipeline_mode<synchronous>, transform_indices = @transform_3, window_bounds = array<i64: 32, 1>}, {transform_indices = @transform_4, window_bounds = array<i64: 72, 128>}, {pipeline_mode = #tpu.pipeline_mode<synchronous>, transform_indices = @transform_5, window_bounds = array<i64: 32, 12>}, {pipeline_mode = #tpu.pipeline_mode<synchronous>, transform_indices = @transform_6, window_bounds = array<i64: 32, 1>}, {transform_indices = @transform_7, window_bounds = array<i64: 32, 128>}, {transform_indices = @transform_8, window_bounds = array<i64: 32, 128>}]} {
    %c0 = arith.constant 0 : index
    %0 = memref.load %arg1[%c0] : memref<1xf32, #tpu.memory_space<smem>>
    %c0_0 = arith.constant 0 : index
    %c0_1 = arith.constant 0 : index
    %1 = vector.load %arg3[%c0_0, %c0_1] : memref<32x1xf32, #tpu.memory_space<vmem>>, vector<32x1xf32>
    %c0_2 = arith.constant 0 : index
    %c0_3 = arith.constant 0 : index
    %2 = vector.load %arg2[%c0_2, %c0_3] : memref<1x128xf32, #tpu.memory_space<vmem>>, vector<1x128xf32>
    %3 = vector.broadcast %0 : f32 to vector<1x128xf32>
    %4 = arith.mulf %2, %3 : vector<1x128xf32>
    %5 = vector.broadcast %1 : vector<32x1xf32> to vector<32x128xf32>
    %6 = vector.broadcast %4 : vector<1x128xf32> to vector<32x128xf32>
    %7 = arith.mulf %5, %6 : vector<32x128xf32>
    %c0_4 = arith.constant 0 : index
    %c0_5 = arith.constant 0 : index
    %8 = vector.load %arg4[%c0_4, %c0_5] : memref<32x1xf32, #tpu.memory_space<vmem>>, vector<32x1xf32>
    %9 = vector.broadcast %8 : vector<32x1xf32> to vector<32x128xf32>
    %10 = arith.addf %7, %9 : vector<32x128xf32>
    %11 = math.sin %10 : vector<32x128xf32>
    %c0_6 = arith.constant 0 : index
    %c0_7 = arith.constant 0 : index
    %12 = vector.load %arg8[%c0_6, %c0_7] : memref<32x128xf32, #tpu.memory_space<vmem>>, vector<32x128xf32>
    tpu.vector_store %arg8[%c0_6, %c0_7], %11 {strides = array<i32>} : memref<32x128xf32, #tpu.memory_space<vmem>>, vector<32x128xf32>,
    %c0_8 = arith.constant 0 : index
    %c0_9 = arith.constant 0 : index
    %13 = vector.load %arg6[%c0_8, %c0_9] : memref<32x12xf32, #tpu.memory_space<vmem>>, vector<32x12xf32>
    %c0_10 = arith.constant 0 : index
    %c0_11 = arith.constant 0 : index
    %14 = vector.load %arg7[%c0_10, %c0_11] : memref<32x1xf32, #tpu.memory_space<vmem>>, vector<32x1xf32>
    %cst = arith.constant 0.000000e+00 : f32
    %15 = vector.broadcast %cst : f32 to vector<32x128xf32>
    %c0_12 = arith.constant 0 : index
    %c0_13 = arith.constant 0 : index
    %16 = vector.load %arg5[%c0_12, %c0_13] : memref<72x128xf32, #tpu.memory_space<vmem>>, vector<12x128xf32>
    %cst_14 = arith.constant dense<0.000000e+00> : vector<32x128xf32>
    %17 = tpu.matmul %13, %16, %cst_14 {dimension_numbers = #tpu.dot_dimension_numbers<[1], [0], [0], [1], [0, 0, 1, 1], [], []>} : vector<32x12xf32>, vector<12x128xf32>, vector<32x128xf32> -> vector<32x128xf32>
    %18 = vector.broadcast %14 : vector<32x1xf32> to vector<32x128xf32>
    %19 = arith.addf %17, %18 : vector<32x128xf32>
    %cst_15 = arith.constant 0.000000e+00 : f32
    %20 = vector.broadcast %cst_15 : f32 to vector<32x128xf32>
    %21 = arith.maximumf %19, %20 : vector<32x128xf32>
    %22 = arith.addf %15, %21 : vector<32x128xf32>
    %c4 = arith.constant 4 : index
    %c0_16 = arith.constant 0 : index
    %23 = vector.load %arg5[%c4, %c0_16] : memref<72x128xf32, #tpu.memory_space<vmem>>, vector<12x128xf32>
    %cst_17 = arith.constant dense<0.000000e+00> : vector<32x128xf32>
    %24 = tpu.matmul %13, %23, %cst_17 {dimension_numbers = #tpu.dot_dimension_numbers<[1], [0], [0], [1], [0, 0, 1, 1], [], []>} : vector<32x12xf32>, vector<12x128xf32>, vector<32x128xf32> -> vector<32x128xf32>
    %25 = vector.broadcast %14 : vector<32x1xf32> to vector<32x128xf32>
    %26 = arith.addf %24, %25 : vector<32x128xf32>
    %cst_18 = arith.constant 0.000000e+00 : f32
    %27 = vector.broadcast %cst_18 : f32 to vector<32x128xf32>
    %28 = arith.maximumf %26, %27 : vector<32x128xf32>
    %29 = arith.addf %22, %28 : vector<32x128xf32>
    %c8 = arith.constant 8 : index
    %c0_19 = arith.constant 0 : index
    %30 = vector.load %arg5[%c8, %c0_19] : memref<72x128xf32, #tpu.memory_space<vmem>>, vector<12x128xf32>
    %cst_20 = arith.constant dense<0.000000e+00> : vector<32x128xf32>
    %31 = tpu.matmul %13, %30, %cst_20 {dimension_numbers = #tpu.dot_dimension_numbers<[1], [0], [0], [1], [0, 0, 1, 1], [], []>} : vector<32x12xf32>, vector<12x128xf32>, vector<32x128xf32> -> vector<32x128xf32>
    %32 = vector.broadcast %14 : vector<32x1xf32> to vector<32x128xf32>
    %33 = arith.addf %31, %32 : vector<32x128xf32>
    %cst_21 = arith.constant 0.000000e+00 : f32
    %34 = vector.broadcast %cst_21 : f32 to vector<32x128xf32>
    %35 = arith.maximumf %33, %34 : vector<32x128xf32>
    %36 = arith.addf %29, %35 : vector<32x128xf32>
    %c12 = arith.constant 12 : index
    %c0_22 = arith.constant 0 : index
    %37 = vector.load %arg5[%c12, %c0_22] : memref<72x128xf32, #tpu.memory_space<vmem>>, vector<12x128xf32>
    %cst_23 = arith.constant dense<0.000000e+00> : vector<32x128xf32>
    %38 = tpu.matmul %13, %37, %cst_23 {dimension_numbers = #tpu.dot_dimension_numbers<[1], [0], [0], [1], [0, 0, 1, 1], [], []>} : vector<32x12xf32>, vector<12x128xf32>, vector<32x128xf32> -> vector<32x128xf32>
    %39 = vector.broadcast %14 : vector<32x1xf32> to vector<32x128xf32>
    %40 = arith.addf %38, %39 : vector<32x128xf32>
    %cst_24 = arith.constant 0.000000e+00 : f32
    %41 = vector.broadcast %cst_24 : f32 to vector<32x128xf32>
    %42 = arith.maximumf %40, %41 : vector<32x128xf32>
    %43 = arith.addf %36, %42 : vector<32x128xf32>
    %c16 = arith.constant 16 : index
    %c0_25 = arith.constant 0 : index
    %44 = vector.load %arg5[%c16, %c0_25] : memref<72x128xf32, #tpu.memory_space<vmem>>, vector<12x128xf32>
    %cst_26 = arith.constant dense<0.000000e+00> : vector<32x128xf32>
    %45 = tpu.matmul %13, %44, %cst_26 {dimension_numbers = #tpu.dot_dimension_numbers<[1], [0], [0], [1], [0, 0, 1, 1], [], []>} : vector<32x12xf32>, vector<12x128xf32>, vector<32x128xf32> -> vector<32x128xf32>
    %46 = vector.broadcast %14 : vector<32x1xf32> to vector<32x128xf32>
    %47 = arith.addf %45, %46 : vector<32x128xf32>
    %cst_27 = arith.constant 0.000000e+00 : f32
    %48 = vector.broadcast %cst_27 : f32 to vector<32x128xf32>
    %49 = arith.maximumf %47, %48 : vector<32x128xf32>
    %50 = arith.addf %43, %49 : vector<32x128xf32>
    %c20 = arith.constant 20 : index
    %c0_28 = arith.constant 0 : index
    %51 = vector.load %arg5[%c20, %c0_28] : memref<72x128xf32, #tpu.memory_space<vmem>>, vector<12x128xf32>
    %cst_29 = arith.constant dense<0.000000e+00> : vector<32x128xf32>
    %52 = tpu.matmul %13, %51, %cst_29 {dimension_numbers = #tpu.dot_dimension_numbers<[1], [0], [0], [1], [0, 0, 1, 1], [], []>} : vector<32x12xf32>, vector<12x128xf32>, vector<32x128xf32> -> vector<32x128xf32>
    %53 = vector.broadcast %14 : vector<32x1xf32> to vector<32x128xf32>
    %54 = arith.addf %52, %53 : vector<32x128xf32>
    %cst_30 = arith.constant 0.000000e+00 : f32
    %55 = vector.broadcast %cst_30 : f32 to vector<32x128xf32>
    %56 = arith.maximumf %54, %55 : vector<32x128xf32>
    %57 = arith.addf %50, %56 : vector<32x128xf32>
    %c24 = arith.constant 24 : index
    %c0_31 = arith.constant 0 : index
    %58 = vector.load %arg5[%c24, %c0_31] : memref<72x128xf32, #tpu.memory_space<vmem>>, vector<12x128xf32>
    %cst_32 = arith.constant dense<0.000000e+00> : vector<32x128xf32>
    %59 = tpu.matmul %13, %58, %cst_32 {dimension_numbers = #tpu.dot_dimension_numbers<[1], [0], [0], [1], [0, 0, 1, 1], [], []>} : vector<32x12xf32>, vector<12x128xf32>, vector<32x128xf32> -> vector<32x128xf32>
    %60 = vector.broadcast %14 : vector<32x1xf32> to vector<32x128xf32>
    %61 = arith.addf %59, %60 : vector<32x128xf32>
    %cst_33 = arith.constant 0.000000e+00 : f32
    %62 = vector.broadcast %cst_33 : f32 to vector<32x128xf32>
    %63 = arith.maximumf %61, %62 : vector<32x128xf32>
    %64 = arith.addf %57, %63 : vector<32x128xf32>
    %c28 = arith.constant 28 : index
    %c0_34 = arith.constant 0 : index
    %65 = vector.load %arg5[%c28, %c0_34] : memref<72x128xf32, #tpu.memory_space<vmem>>, vector<12x128xf32>
    %cst_35 = arith.constant dense<0.000000e+00> : vector<32x128xf32>
    %66 = tpu.matmul %13, %65, %cst_35 {dimension_numbers = #tpu.dot_dimension_numbers<[1], [0], [0], [1], [0, 0, 1, 1], [], []>} : vector<32x12xf32>, vector<12x128xf32>, vector<32x128xf32> -> vector<32x128xf32>
    %67 = vector.broadcast %14 : vector<32x1xf32> to vector<32x128xf32>
    %68 = arith.addf %66, %67 : vector<32x128xf32>
    %cst_36 = arith.constant 0.000000e+00 : f32
    %69 = vector.broadcast %cst_36 : f32 to vector<32x128xf32>
    %70 = arith.maximumf %68, %69 : vector<32x128xf32>
    %71 = arith.addf %64, %70 : vector<32x128xf32>
    %c32 = arith.constant 32 : index
    %c0_37 = arith.constant 0 : index
    %72 = vector.load %arg5[%c32, %c0_37] : memref<72x128xf32, #tpu.memory_space<vmem>>, vector<12x128xf32>
    %cst_38 = arith.constant dense<0.000000e+00> : vector<32x128xf32>
    %73 = tpu.matmul %13, %72, %cst_38 {dimension_numbers = #tpu.dot_dimension_numbers<[1], [0], [0], [1], [0, 0, 1, 1], [], []>} : vector<32x12xf32>, vector<12x128xf32>, vector<32x128xf32> -> vector<32x128xf32>
    %74 = vector.broadcast %14 : vector<32x1xf32> to vector<32x128xf32>
    %75 = arith.addf %73, %74 : vector<32x128xf32>
    %cst_39 = arith.constant 0.000000e+00 : f32
    %76 = vector.broadcast %cst_39 : f32 to vector<32x128xf32>
    %77 = arith.maximumf %75, %76 : vector<32x128xf32>
    %78 = arith.addf %71, %77 : vector<32x128xf32>
    %c36 = arith.constant 36 : index
    %c0_40 = arith.constant 0 : index
    %79 = vector.load %arg5[%c36, %c0_40] : memref<72x128xf32, #tpu.memory_space<vmem>>, vector<12x128xf32>
    %cst_41 = arith.constant dense<0.000000e+00> : vector<32x128xf32>
    %80 = tpu.matmul %13, %79, %cst_41 {dimension_numbers = #tpu.dot_dimension_numbers<[1], [0], [0], [1], [0, 0, 1, 1], [], []>} : vector<32x12xf32>, vector<12x128xf32>, vector<32x128xf32> -> vector<32x128xf32>
    %81 = vector.broadcast %14 : vector<32x1xf32> to vector<32x128xf32>
    %82 = arith.addf %80, %81 : vector<32x128xf32>
    %cst_42 = arith.constant 0.000000e+00 : f32
    %83 = vector.broadcast %cst_42 : f32 to vector<32x128xf32>
    %84 = arith.maximumf %82, %83 : vector<32x128xf32>
    %85 = arith.addf %78, %84 : vector<32x128xf32>
    %c40 = arith.constant 40 : index
    %c0_43 = arith.constant 0 : index
    %86 = vector.load %arg5[%c40, %c0_43] : memref<72x128xf32, #tpu.memory_space<vmem>>, vector<12x128xf32>
    %cst_44 = arith.constant dense<0.000000e+00> : vector<32x128xf32>
    %87 = tpu.matmul %13, %86, %cst_44 {dimension_numbers = #tpu.dot_dimension_numbers<[1], [0], [0], [1], [0, 0, 1, 1], [], []>} : vector<32x12xf32>, vector<12x128xf32>, vector<32x128xf32> -> vector<32x128xf32>
    %88 = vector.broadcast %14 : vector<32x1xf32> to vector<32x128xf32>
    %89 = arith.addf %87, %88 : vector<32x128xf32>
    %cst_45 = arith.constant 0.000000e+00 : f32
    %90 = vector.broadcast %cst_45 : f32 to vector<32x128xf32>
    %91 = arith.maximumf %89, %90 : vector<32x128xf32>
    %92 = arith.addf %85, %91 : vector<32x128xf32>
    %c44 = arith.constant 44 : index
    %c0_46 = arith.constant 0 : index
    %93 = vector.load %arg5[%c44, %c0_46] : memref<72x128xf32, #tpu.memory_space<vmem>>, vector<12x128xf32>
    %cst_47 = arith.constant dense<0.000000e+00> : vector<32x128xf32>
    %94 = tpu.matmul %13, %93, %cst_47 {dimension_numbers = #tpu.dot_dimension_numbers<[1], [0], [0], [1], [0, 0, 1, 1], [], []>} : vector<32x12xf32>, vector<12x128xf32>, vector<32x128xf32> -> vector<32x128xf32>
    %95 = vector.broadcast %14 : vector<32x1xf32> to vector<32x128xf32>
    %96 = arith.addf %94, %95 : vector<32x128xf32>
    %cst_48 = arith.constant 0.000000e+00 : f32
    %97 = vector.broadcast %cst_48 : f32 to vector<32x128xf32>
    %98 = arith.maximumf %96, %97 : vector<32x128xf32>
    %99 = arith.addf %92, %98 : vector<32x128xf32>
    %c48 = arith.constant 48 : index
    %c0_49 = arith.constant 0 : index
    %100 = vector.load %arg5[%c48, %c0_49] : memref<72x128xf32, #tpu.memory_space<vmem>>, vector<12x128xf32>
    %cst_50 = arith.constant dense<0.000000e+00> : vector<32x128xf32>
    %101 = tpu.matmul %13, %100, %cst_50 {dimension_numbers = #tpu.dot_dimension_numbers<[1], [0], [0], [1], [0, 0, 1, 1], [], []>} : vector<32x12xf32>, vector<12x128xf32>, vector<32x128xf32> -> vector<32x128xf32>
    %102 = vector.broadcast %14 : vector<32x1xf32> to vector<32x128xf32>
    %103 = arith.addf %101, %102 : vector<32x128xf32>
    %cst_51 = arith.constant 0.000000e+00 : f32
    %104 = vector.broadcast %cst_51 : f32 to vector<32x128xf32>
    %105 = arith.maximumf %103, %104 : vector<32x128xf32>
    %106 = arith.addf %99, %105 : vector<32x128xf32>
    %c52 = arith.constant 52 : index
    %c0_52 = arith.constant 0 : index
    %107 = vector.load %arg5[%c52, %c0_52] : memref<72x128xf32, #tpu.memory_space<vmem>>, vector<12x128xf32>
    %cst_53 = arith.constant dense<0.000000e+00> : vector<32x128xf32>
    %108 = tpu.matmul %13, %107, %cst_53 {dimension_numbers = #tpu.dot_dimension_numbers<[1], [0], [0], [1], [0, 0, 1, 1], [], []>} : vector<32x12xf32>, vector<12x128xf32>, vector<32x128xf32> -> vector<32x128xf32>
    %109 = vector.broadcast %14 : vector<32x1xf32> to vector<32x128xf32>
    %110 = arith.addf %108, %109 : vector<32x128xf32>
    %cst_54 = arith.constant 0.000000e+00 : f32
    %111 = vector.broadcast %cst_54 : f32 to vector<32x128xf32>
    %112 = arith.maximumf %110, %111 : vector<32x128xf32>
    %113 = arith.addf %106, %112 : vector<32x128xf32>
    %c56 = arith.constant 56 : index
    %c0_55 = arith.constant 0 : index
    %114 = vector.load %arg5[%c56, %c0_55] : memref<72x128xf32, #tpu.memory_space<vmem>>, vector<12x128xf32>
    %cst_56 = arith.constant dense<0.000000e+00> : vector<32x128xf32>
    %115 = tpu.matmul %13, %114, %cst_56 {dimension_numbers = #tpu.dot_dimension_numbers<[1], [0], [0], [1], [0, 0, 1, 1], [], []>} : vector<32x12xf32>, vector<12x128xf32>, vector<32x128xf32> -> vector<32x128xf32>
    %116 = vector.broadcast %14 : vector<32x1xf32> to vector<32x128xf32>
    %117 = arith.addf %115, %116 : vector<32x128xf32>
    %cst_57 = arith.constant 0.000000e+00 : f32
    %118 = vector.broadcast %cst_57 : f32 to vector<32x128xf32>
    %119 = arith.maximumf %117, %118 : vector<32x128xf32>
    %120 = arith.addf %113, %119 : vector<32x128xf32>
    %c60 = arith.constant 60 : index
    %c0_58 = arith.constant 0 : index
    %121 = vector.load %arg5[%c60, %c0_58] : memref<72x128xf32, #tpu.memory_space<vmem>>, vector<12x128xf32>
    %cst_59 = arith.constant dense<0.000000e+00> : vector<32x128xf32>
    %122 = tpu.matmul %13, %121, %cst_59 {dimension_numbers = #tpu.dot_dimension_numbers<[1], [0], [0], [1], [0, 0, 1, 1], [], []>} : vector<32x12xf32>, vector<12x128xf32>, vector<32x128xf32> -> vector<32x128xf32>
    %123 = vector.broadcast %14 : vector<32x1xf32> to vector<32x128xf32>
    %124 = arith.addf %122, %123 : vector<32x128xf32>
    %cst_60 = arith.constant 0.000000e+00 : f32
    %125 = vector.broadcast %cst_60 : f32 to vector<32x128xf32>
    %126 = arith.maximumf %124, %125 : vector<32x128xf32>
    %127 = arith.addf %120, %126 : vector<32x128xf32>
    %cst_61 = arith.constant 6.250000e-02 : f32
    %128 = vector.broadcast %cst_61 : f32 to vector<32x128xf32>
    %129 = arith.mulf %127, %128 : vector<32x128xf32>
    %c0_62 = arith.constant 0 : index
    %c0_63 = arith.constant 0 : index
    %130 = vector.load %arg9[%c0_62, %c0_63] : memref<32x128xf32, #tpu.memory_space<vmem>>, vector<32x128xf32>
    tpu.vector_store %arg9[%c0_62, %c0_63], %129 {strides = array<i32>} : memref<32x128xf32, #tpu.memory_space<vmem>>, vector<32x128xf32>,
    return
  }
  func.func @transform_0(%arg0: i32) -> i32 {
    %c0_i32 = arith.constant 0 : i32
    %c0_i32_0 = arith.constant 0 : i32
    return %c0_i32 : i32
  }
  func.func @transform_1(%arg0: i32) -> (i32, i32) {
    %c0_i32 = arith.constant 0 : i32
    %c0_i32_0 = arith.constant 0 : i32
    return %c0_i32, %arg0 : i32, i32
  }
  func.func @transform_2(%arg0: i32) -> (i32, i32) {
    %c0_i32 = arith.constant 0 : i32
    %c0_i32_0 = arith.constant 0 : i32
    %c0_i32_1 = arith.constant 0 : i32
    return %c0_i32, %c0_i32_0 : i32, i32
  }
  func.func @transform_3(%arg0: i32) -> (i32, i32) {
    %c0_i32 = arith.constant 0 : i32
    %c0_i32_0 = arith.constant 0 : i32
    %c0_i32_1 = arith.constant 0 : i32
    return %c0_i32, %c0_i32_0 : i32, i32
  }
  func.func @transform_4(%arg0: i32) -> (i32, i32) {
    %c0_i32 = arith.constant 0 : i32
    %c0_i32_0 = arith.constant 0 : i32
    return %c0_i32, %arg0 : i32, i32
  }
  func.func @transform_5(%arg0: i32) -> (i32, i32) {
    %c0_i32 = arith.constant 0 : i32
    %c0_i32_0 = arith.constant 0 : i32
    %c0_i32_1 = arith.constant 0 : i32
    return %c0_i32, %c0_i32_0 : i32, i32
  }
  func.func @transform_6(%arg0: i32) -> (i32, i32) {
    %c0_i32 = arith.constant 0 : i32
    %c0_i32_0 = arith.constant 0 : i32
    %c0_i32_1 = arith.constant 0 : i32
    return %c0_i32, %c0_i32_0 : i32, i32
  }
  func.func @transform_7(%arg0: i32) -> (i32, i32) {
    %c0_i32 = arith.constant 0 : i32
    %c0_i32_0 = arith.constant 0 : i32
    return %c0_i32, %arg0 : i32, i32
  }
  func.func @transform_8(%arg0: i32) -> (i32, i32) {
    %c0_i32 = arith.constant 0 : i32
    %c0_i32_0 = arith.constant 0 : i32
    return %c0_i32, %arg0 : i32, i32
  }
}

</mosaic_0001>

<bundles_post_ra>
// kernel: tpu_custom_call.1
= control target key start
LH: loop header
LB: loop body
LE: loop exit
PB: predicated region body
PF: predicated region fallthrough
CT: control target
= control target key end

     0   :  { %15 = vsyncpa [#allocation4], 0  ;;  %vm560_vm0 = vcmask 1043456   ;;  %v2608_v4 = vmov 0   ;;  %vm547_vm1 = vcmask 97280   ;;  %s3556_s0 = inlined_call_operand.<no memory space> [shape: f32[1], index: 0, kind: input, shape index: {}]   ;;  %s3557_s1 = inlined_call_operand.vmem [shape: f32[1,128], index: 1, kind: input, shape index: {}]   ;;  %s3558_s2 = inlined_call_operand.vmem [shape: f32[32,1], index: 2, kind: input, shape index: {}]   ;;  %s3559_s3 = inlined_call_operand.vmem [shape: f32[32,1], index: 3, kind: input, shape index: {}]   ;;  %s3560_s4 = inlined_call_operand.vmem [shape: f32[72,128], index: 4, kind: input, shape index: {}]   ;;  %s3561_s5 = inlined_call_operand.vmem [shape: f32[32,12], index: 5, kind: input, shape index: {}]   ;;  %s3562_s6 = inlined_call_operand.vmem [shape: f32[32,1], index: 6, kind: input, shape index: {}]   ;;  %s3563_s7 = inlined_call_operand.hbm [shape: f32[32,128], index: 7, kind: output, shape index: {0}]   ;;  %s3564_s8 = inlined_call_operand.hbm [shape: f32[32,128], index: 8, kind: output, shape index: {1}]  }
   0x1   :  { %v526_v0 = vld [vmem:[%s3560_s4 + $0x8] sm:$0xf]  ;;  %v658_v1 = vld [vmem:[%s3560_s4 + $0xc] sm:$0xf]  ;;  %v34_v2 = vld [vmem:[%s3558_s2 + $0x10] sm:$0xff]  ;;  %2547 = vset.pattern.permute.xlu1 %v2608_v4  ;;  %2546 = vset.pattern.permute.xlu0 %v2608_v4 }
   0x2   :  { %2359 = vmatprep.subr.msk.mxu0 %vm560_vm0, %v526_v0  ;;  %2369 = vmatprep.subr.msk.mxu1 %vm560_vm0, %v658_v1  ;;  %v32_v3 = vld [vmem:[%s3558_s2] sm:$0xff]  ;;  %v2694_v8 = vld [vmem:[%s3561_s5 + $0x8] sm:$0xff]  ;;  %v756_v9 = vld [vmem:[%s3560_s4 + $0x10] sm:$0xf] }
   0x3   :  { %v525_v5 = vld [vmem:[%s3560_s4] sm:$0xff]  ;;  %2360 = vmatpush3.msk.msra.mxu0 %vm560_vm0, %v526_v0  ;;  %2370 = vmatpush3.msk.msra.mxu1 %vm560_vm0, %v658_v1  ;;  %v35_v10 = vld [vmem:[%s3558_s2 + $0x18] sm:$0xff]  ;;  %v33_v11 = vld [vmem:[%s3558_s2 + $0x8] sm:$0xff] }
   0x4   :  { %v657_v6 = vld [vmem:[%s3560_s4 + $0x4] sm:$0xff]  ;;  %51 = vperm.xlu1 %2547, %v34_v2   ;;  %41 = vperm.xlu0 %2546, %v32_v3   ;;  %v854_v12 = vld [vmem:[%s3560_s4 + $0x14] sm:$0xf]  ;;  %v2726_v14 = vld [vmem:[%s3561_s5 + $0x18] sm:$0xff] }
   0x5   :  { %v2689_v7 = vld [vmem:[%s3561_s5] sm:$0xff]  ;;  %2361 = vmatprep.subr.mxu0 %v525_v5  ;;  %2371 = vmatprep.subr.mxu1 %v657_v6  ;;  %v2719_v13 = vld [vmem:[%s3561_s5 + $0x10] sm:$0xff]  ;;  %v755_v15 = vld [vmem:[%s3560_s4 + $0x8] sm:$0xff] }
   0x6   :  { %2362 = vmatpush3.msra.mxu0 %v525_v5  ;;  %2363 = vmatprep.mubr.msk.f32.mxu0 %vm547_vm1, %v2689_v7  ;;  %v70_v16 = vld [vmem:[%s3559_s3 + $0x8] sm:$0xff]  ;;  %v69_v17 = vld [vmem:[%s3559_s3] sm:$0xff]  ;;  %v952_v19 = vld [vmem:[%s3560_s4 + $0x18] sm:$0xf] }
   0x7   :  { %2372 = vmatpush3.msra.mxu1 %v657_v6  ;;  %2373 = vmatprep.mubr.msk.f32.mxu1 %vm547_vm1, %v2689_v7  ;;  %v853_v18 = vld [vmem:[%s3560_s4 + $0xc] sm:$0xff]  ;;  %v72_v20 = vld [vmem:[%s3559_s3 + $0x18] sm:$0xff] }
   0x8   :  { %2364 = vmatmul.mubr.msk.f32.vlgmr.msra.gmra.mxu0 %vm547_vm1, %v2694_v8  ;;  %2374 = vmatmul.mubr.msk.f32.vlgmr.msra.gmra.mxu1 %vm547_vm1, %v2694_v8 }
   0x9   :  { %2379 = vmatprep.subr.msk.mxu0 %vm560_vm0, %v756_v9  ;;  %56 = vperm.xlu1 %2547, %v35_v10  }
   0xa   :  { %2380 = vmatpush3.msk.msra.mxu0 %vm560_vm0, %v756_v9  ;;  %46 = vperm.xlu0 %2546, %v33_v11  }
   0xb   :  { %2389 = vmatprep.subr.msk.mxu1 %vm560_vm0, %v854_v12  ;;  %2366 = vmatprep.mubr.msk.f32.mxu0 %vm547_vm1, %v2719_v13 }
   0xc   :  { %2376 = vmatprep.mubr.msk.f32.mxu1 %vm547_vm1, %v2719_v13  ;;  %2390 = vmatpush3.msk.msra.mxu1 %vm560_vm0, %v854_v12 }
   0xd   :  { %2367 = vmatmul.mubr.msk.f32.gmra.mxu0 %vm547_vm1, %v2726_v14  ;;  %2377 = vmatmul.mubr.msk.f32.gmra.mxu1 %vm547_vm1, %v2726_v14 }
   0xe   :  { %2381 = vmatprep.subr.mxu0 %v755_v15  ;;  %80 = vperm.xlu1 %2547, %v70_v16  }
   0xf   :  { %2382 = vmatpush3.msra.mxu0 %v755_v15  ;;  %75 = vperm.xlu0 %2546, %v69_v17  }
  0x10   :  { %2391 = vmatprep.subr.mxu1 %v853_v18  ;;  %2383 = vmatprep.mubr.msk.f32.mxu0 %vm547_vm1, %v2689_v7 }
  0x11   :  { %16 = vsyncpa [#allocation6], 0  ;;  %2392 = vmatpush3.msra.mxu1 %v853_v18  ;;  %2393 = vmatprep.mubr.msk.f32.mxu1 %vm547_vm1, %v2689_v7  ;;  %v71_v21 = vld [vmem:[%s3559_s3 + $0x10] sm:$0xff]  ;;  %v1050_v22 = vld [vmem:[%s3560_s4 + $0x1c] sm:$0xf]  ;;  %v60_v49 = vlaneseq  ;;  %v37_v52 = vstv %s3556_s0  ;;  %s2615_s0 = smov [#allocation5]  }
  0x12   :  { %2384 = vmatmul.mubr.msk.f32.vlgmr.msra.gmra.mxu0 %vm547_vm1, %v2694_v8  ;;  %2394 = vmatmul.mubr.msk.f32.vlgmr.msra.gmra.mxu1 %vm547_vm1, %v2694_v8  ;;  %v951_v23 = vld [vmem:[%s3560_s4 + $0x10] sm:$0xff]  ;;  %v1148_v25 = vld [vmem:[%s3560_s4 + $0x20] sm:$0xf]  ;;  %v1246_v26 = vld [vmem:[%s3560_s4 + $0x24] sm:$0xf]  ;;  %s2616_s28 = smov [#allocation3]  }
  0x13   :  { %2399 = vmatprep.subr.msk.mxu0 %vm560_vm0, %v952_v19  ;;  %90 = vperm.xlu1 %2547, %v72_v20   ;;  %v1049_v24 = vld [vmem:[%s3560_s4 + $0x14] sm:$0xff]  ;;  %v1245_v28 = vld [vmem:[%s3560_s4 + $0x1c] sm:$0xff]  ;;  %v1344_v29 = vld [vmem:[%s3560_s4 + $0x28] sm:$0xf]  ;;  %v61_v50 = vshrl.u32 %v60_v49, 7  ;;  %s2140_s29 = sshll.u32 %s2616_s28, 4  ;;  %s2141_s29 = int_to_ptr.vmem [resolvable:$true] %s2140_s29 }
  0x14   :  { %2400 = vmatpush3.msk.msra.mxu0 %vm560_vm0, %v952_v19  ;;  %85 = vperm.xlu0 %2546, %v71_v21   ;;  %v1147_v27 = vld [vmem:[%s3560_s4 + $0x18] sm:$0xff]  ;;  %v1442_v30 = vld [vmem:[%s3560_s4 + $0x2c] sm:$0xf]  ;;  %v1343_v31 = vld [vmem:[%s3560_s4 + $0x20] sm:$0xff] }
  0x15   :  { %2409 = vmatprep.subr.msk.mxu1 %vm560_vm0, %v1050_v22  ;;  %2386 = vmatprep.mubr.msk.f32.mxu0 %vm547_vm1, %v2719_v13  ;;  %v1441_v32 = vld [vmem:[%s3560_s4 + $0x24] sm:$0xff]  ;;  %v1540_v33 = vld [vmem:[%s3560_s4 + $0x30] sm:$0xf]  ;;  %v1638_v34 = vld [vmem:[%s3560_s4 + $0x34] sm:$0xf]  ;;  %v62_v54 = vsub.s32 0, %v61_v50 }
  0x16   :  { %2396 = vmatprep.mubr.msk.f32.mxu1 %vm547_vm1, %v2719_v13  ;;  %2410 = vmatpush3.msk.msra.mxu1 %vm560_vm0, %v1050_v22  ;;  %v1539_v35 = vld [vmem:[%s3560_s4 + $0x28] sm:$0xff]  ;;  %v1736_v37 = vld [vmem:[%s3560_s4 + $0x38] sm:$0xf]  ;;  %v521_v39 = vld [vmem:[%s3562_s6] sm:$0xff] }
  0x17   :  { %2387 = vmatmul.mubr.msk.f32.gmra.mxu0 %vm547_vm1, %v2726_v14  ;;  %2397 = vmatmul.mubr.msk.f32.gmra.mxu1 %vm547_vm1, %v2726_v14  ;;  %v1637_v36 = vld [vmem:[%s3560_s4 + $0x2c] sm:$0xff]  ;;  %v1834_v40 = vld [vmem:[%s3560_s4 + $0x3c] sm:$0xf]  ;;  %v1833_v44 = vld [vmem:[%s3560_s4 + $0x34] sm:$0xff] }
  0x18   :  { %2401 = vmatprep.subr.mxu0 %v951_v23  ;;  %2411 = vmatprep.subr.mxu1 %v1049_v24  ;;  %v522_v38 = vld [vmem:[%s3562_s6 + $0x8] sm:$0xff]  ;;  %v1735_v41 = vld [vmem:[%s3560_s4 + $0x30] sm:$0xff]  ;;  %v524_v42 = vld [vmem:[%s3562_s6 + $0x18] sm:$0xff] }
  0x19   :  { %2402 = vmatpush3.msra.mxu0 %v951_v23  ;;  %2403 = vmatprep.mubr.msk.f32.mxu0 %vm547_vm1, %v2689_v7  ;;  %v523_v43 = vld [vmem:[%s3562_s6 + $0x10] sm:$0xff]  ;;  %v1932_v45 = vld [vmem:[%s3560_s4 + $0x40] sm:$0xf]  ;;  %v2030_v46 = vld [vmem:[%s3560_s4 + $0x44] sm:$0xf] }
  0x1a   :  { %2412 = vmatpush3.msra.mxu1 %v1049_v24  ;;  %2413 = vmatprep.mubr.msk.f32.mxu1 %vm547_vm1, %v2689_v7  ;;  %v1931_v47 = vld [vmem:[%s3560_s4 + $0x38] sm:$0xff]  ;;  %v36_v51 = vld [vmem:[%s3557_s1] sm:$0x1]  ;;  %s2152_s1 = sshll.u32 %s2615_s0, 4  ;;  %s2153_s1 = int_to_ptr.vmem [resolvable:$true] %s2152_s1 }
  0x1b   :  { %2404 = vmatmul.mubr.msk.f32.vlgmr.msra.gmra.mxu0 %vm547_vm1, %v2694_v8  ;;  %2414 = vmatmul.mubr.msk.f32.vlgmr.msra.gmra.mxu1 %vm547_vm1, %v2694_v8  ;;  %v2029_v48 = vld [vmem:[%s3560_s4 + $0x3c] sm:$0xff]  ;;  %v38_v53 = vmul.f32 %v37_v52, %v36_v51  ;;  %v2614_v52 = vmov 1326507024   ;;  %s2564_s30 = scalar_lea.vmem %s2153_s1, 512  ;;  %p2569_p1 = scmp.lt.s32.totalorder %s2153_s1, %s2153_s1 }
  0x1c   :  { %2419 = vmatprep.subr.msk.mxu0 %vm560_vm0, %v1148_v25  ;;  %2429 = vmatprep.subr.msk.mxu1 %vm560_vm0, %v1246_v26  ;;  %p2565_p0 = scmp.ne.s32.totalorder %s2153_s1, %s2564_s30  ;;  %p2570_p2 = scmp.lt.s32.totalorder %s2564_s30, %s2564_s30 }
  0x1d   :  { %2420 = vmatpush3.msk.msra.mxu0 %vm560_vm0, %v1148_v25  ;;  %2406 = vmatprep.mubr.msk.f32.mxu0 %vm547_vm1, %v2719_v13  ;;  %v63_v57 = vrot.slane %v38_v53, %v62_v54 }
  0x1e   :  { %2416 = vmatprep.mubr.msk.f32.mxu1 %vm547_vm1, %v2719_v13  ;;  %2430 = vmatpush3.msk.msra.mxu1 %vm560_vm0, %v1246_v26  ;;  %p2571_p3 = por %p2570_p2, %p2569_p1 }
  0x1f   :  { %2407 = vmatmul.mubr.msk.f32.gmra.mxu0 %vm547_vm1, %v2726_v14  ;;  %2417 = vmatmul.mubr.msk.f32.gmra.mxu1 %vm547_vm1, %v2726_v14 }
  0x20   :  { %2421 = vmatprep.subr.mxu0 %v1147_v27  ;;  %2431 = vmatprep.subr.mxu1 %v1245_v28  ;;  %p2572_p4 = pnand %p2571_p3, %p2565_p0 }
  0x21   :  { %2422 = vmatpush3.msra.mxu0 %v1147_v27  ;;  %2423 = vmatprep.mubr.msk.f32.mxu0 %vm547_vm1, %v2689_v7 }
  0x22   :  { %2432 = vmatpush3.msra.mxu1 %v1245_v28  ;;  %2433 = vmatprep.mubr.msk.f32.mxu1 %vm547_vm1, %v2689_v7 }
  0x23   :  { %2424 = vmatmul.mubr.msk.f32.vlgmr.msra.gmra.mxu0 %vm547_vm1, %v2694_v8  ;;  %2434 = vmatmul.mubr.msk.f32.vlgmr.msra.gmra.mxu1 %vm547_vm1, %v2694_v8 }
  0x24   :  { %2439 = vmatprep.subr.msk.mxu0 %vm560_vm0, %v1344_v29  ;;  %2449 = vmatprep.subr.msk.mxu1 %vm560_vm0, %v1442_v30 }
  0x25   :  { %2440 = vmatpush3.msk.msra.mxu0 %vm560_vm0, %v1344_v29  ;;  %2426 = vmatprep.mubr.msk.f32.mxu0 %vm547_vm1, %v2719_v13 }
  0x26   :  { %2436 = vmatprep.mubr.msk.f32.mxu1 %vm547_vm1, %v2719_v13  ;;  %2450 = vmatpush3.msk.msra.mxu1 %vm560_vm0, %v1442_v30 }
  0x27   :  { %2427 = vmatmul.mubr.msk.f32.gmra.mxu0 %vm547_vm1, %v2726_v14  ;;  %2437 = vmatmul.mubr.msk.f32.gmra.mxu1 %vm547_vm1, %v2726_v14 }
  0x28   :  { %2441 = vmatprep.subr.mxu0 %v1343_v31  ;;  %2451 = vmatprep.subr.mxu1 %v1441_v32 }
  0x29   :  { %2442 = vmatpush3.msra.mxu0 %v1343_v31  ;;  %2443 = vmatprep.mubr.msk.f32.mxu0 %vm547_vm1, %v2689_v7 }
  0x2a   :  { %2452 = vmatpush3.msra.mxu1 %v1441_v32  ;;  %2453 = vmatprep.mubr.msk.f32.mxu1 %vm547_vm1, %v2689_v7 }
  0x2b   :  { %2444 = vmatmul.mubr.msk.f32.vlgmr.msra.gmra.mxu0 %vm547_vm1, %v2694_v8  ;;  %2454 = vmatmul.mubr.msk.f32.vlgmr.msra.gmra.mxu1 %vm547_vm1, %v2694_v8 }
  0x2c   :  { %2459 = vmatprep.subr.msk.mxu0 %vm560_vm0, %v1540_v33  ;;  %2469 = vmatprep.subr.msk.mxu1 %vm560_vm0, %v1638_v34 }
  0x2d   :  { %2460 = vmatpush3.msk.msra.mxu0 %vm560_vm0, %v1540_v33  ;;  %2446 = vmatprep.mubr.msk.f32.mxu0 %vm547_vm1, %v2719_v13 }
  0x2e   :  { %2456 = vmatprep.mubr.msk.f32.mxu1 %vm547_vm1, %v2719_v13  ;;  %2470 = vmatpush3.msk.msra.mxu1 %vm560_vm0, %v1638_v34 }
  0x2f   :  { %2447 = vmatmul.mubr.msk.f32.gmra.mxu0 %vm547_vm1, %v2726_v14  ;;  %2457 = vmatmul.mubr.msk.f32.gmra.mxu1 %vm547_vm1, %v2726_v14 }
  0x30   :  { %2461 = vmatprep.subr.mxu0 %v1539_v35  ;;  %2471 = vmatprep.subr.mxu1 %v1637_v36 }
  0x31   :  { %2462 = vmatpush3.msra.mxu0 %v1539_v35  ;;  %2463 = vmatprep.mubr.msk.f32.mxu0 %vm547_vm1, %v2689_v7 }
  0x32   :  { %2472 = vmatpush3.msra.mxu1 %v1637_v36  ;;  %2473 = vmatprep.mubr.msk.f32.mxu1 %vm547_vm1, %v2689_v7  ;;  %v2609_v36 = vmov 683565275  }
  0x33   :  { %2464 = vmatmul.mubr.msk.f32.vlgmr.msra.gmra.mxu0 %vm547_vm1, %v2694_v8  ;;  %2474 = vmatmul.mubr.msk.f32.vlgmr.msra.gmra.mxu1 %vm547_vm1, %v2694_v8 }
  0x34   :  { %2479 = vmatprep.subr.msk.mxu0 %vm560_vm0, %v1736_v37  ;;  %534 = vperm.xlu1 %2547, %v522_v38   ;;  %v2610_v38 = vmov 2475754826  }
  0x35   :  { %2480 = vmatpush3.msk.msra.mxu0 %vm560_vm0, %v1736_v37  ;;  %529 = vperm.xlu0 %2546, %v521_v39  }
  0x36   :  { %2489 = vmatprep.subr.msk.mxu1 %vm560_vm0, %v1834_v40  ;;  %2466 = vmatprep.mubr.msk.f32.mxu0 %vm547_vm1, %v2719_v13 }
  0x37   :  { %2476 = vmatprep.mubr.msk.f32.mxu1 %vm547_vm1, %v2719_v13  ;;  %2490 = vmatpush3.msk.msra.mxu1 %vm560_vm0, %v1834_v40  ;;  %v2611_v40 = vmov 2131351028  }
  0x38   :  { %2467 = vmatmul.mubr.msk.f32.gmra.mxu0 %vm547_vm1, %v2726_v14  ;;  %2477 = vmatmul.mubr.msk.f32.gmra.mxu1 %vm547_vm1, %v2726_v14 }
  0x39   :  { %2481 = vmatprep.subr.mxu0 %v1735_v41  ;;  %544 = vperm.xlu1 %2547, %v524_v42   ;;  %v2612_v42 = vmov 2102212464  }
  0x3a   :  { %2482 = vmatpush3.msra.mxu0 %v1735_v41  ;;  %539 = vperm.xlu0 %2546, %v523_v43  }
  0x3b   :  { %2491 = vmatprep.subr.mxu1 %v1833_v44  ;;  %2483 = vmatprep.mubr.msk.f32.mxu0 %vm547_vm1, %v2689_v7 }
  0x3c   :  { %2492 = vmatpush3.msra.mxu1 %v1833_v44  ;;  %2493 = vmatprep.mubr.msk.f32.mxu1 %vm547_vm1, %v2689_v7  ;;  %v2613_v44 = vmov 920167782  }
  0x3d   :  { %2484 = vmatmul.mubr.msk.f32.vlgmr.msra.gmra.mxu0 %vm547_vm1, %v2694_v8  ;;  %2494 = vmatmul.mubr.msk.f32.vlgmr.msra.gmra.mxu1 %vm547_vm1, %v2694_v8 }
  0x3e   :  { %2499 = vmatprep.subr.msk.mxu0 %vm560_vm0, %v1932_v45  ;;  %2509 = vmatprep.subr.msk.mxu1 %vm560_vm0, %v2030_v46 }
  0x3f   :  { %2500 = vmatpush3.msk.msra.mxu0 %vm560_vm0, %v1932_v45  ;;  %2486 = vmatprep.mubr.msk.f32.mxu0 %vm547_vm1, %v2719_v13 }
  0x40   :  { %2496 = vmatprep.mubr.msk.f32.mxu1 %vm547_vm1, %v2719_v13  ;;  %2510 = vmatpush3.msk.msra.mxu1 %vm560_vm0, %v2030_v46 }
  0x41   :  { %2487 = vmatmul.mubr.msk.f32.gmra.mxu0 %vm547_vm1, %v2726_v14  ;;  %2497 = vmatmul.mubr.msk.f32.gmra.mxu1 %vm547_vm1, %v2726_v14 }
  0x42   :  { %2501 = vmatprep.subr.mxu0 %v1931_v47  ;;  %2511 = vmatprep.subr.mxu1 %v2029_v48 }
  0x43   :  { %2502 = vmatpush3.msra.mxu0 %v1931_v47  ;;  %2503 = vmatprep.mubr.msk.f32.mxu0 %vm547_vm1, %v2689_v7 }
  0x44   :  { %2512 = vmatpush3.msra.mxu1 %v2029_v48  ;;  %2513 = vmatprep.mubr.msk.f32.mxu1 %vm547_vm1, %v2689_v7 }
  0x45   :  { %2504 = vmatmul.mubr.msk.f32.vlgmr.msra.gmra.mxu0 %vm547_vm1, %v2694_v8  ;;  %2514 = vmatmul.mubr.msk.f32.vlgmr.msra.gmra.mxu1 %vm547_vm1, %v2694_v8 }
  0x46   :  { %2506 = vmatprep.mubr.msk.f32.mxu0 %vm547_vm1, %v2719_v13  ;;  %2516 = vmatprep.mubr.msk.f32.mxu1 %vm547_vm1, %v2719_v13 }
  0x49   :  { %2507 = vmatmul.mubr.msk.f32.gmra.mxu0 %vm547_vm1, %v2726_v14  ;;  %2517 = vmatmul.mubr.msk.f32.gmra.mxu1 %vm547_vm1, %v2726_v14 }
  0x7f   :  { %v52_v55 = vpop.permute.xlu1 %51  ;;  %v42_v56 = vpop.permute.xlu0 %41 }
  0x80   :  { %v65_v61 = vmul.f32 %v63_v57, %v42_v56  ;;  %v67_v10 = vmul.f32 %v63_v57, %v52_v55 }
  0x84   :  { %v57_v58 = vpop.permute.xlu1 %56 }
  0x85   :  { %v47_v59 = vpop.permute.xlu0 %46  ;;  %v68_v1 = vmul.f32 %v63_v57, %v57_v58 }
  0x86   :  { %v66_v60 = vmul.f32 %v63_v57, %v47_v59 }
  0x89   :  { %v81_v62 = vpop.permute.xlu1 %80 }
  0x8a   :  { %v2982_v63 = vadd.f32 %v81_v62, %v66_v60  ;;  %v76_v0 = vpop.permute.xlu0 %75 }
  0x8b   :  { %v2984_v2 = vadd.f32 %v76_v0, %v65_v61 }
  0x8c   :  { %v201_v3 = vand.u32 2147483647, %v2982_v63  ;;  %v204_v4 = vand.u32 2139095040, %v2982_v63  ;;  %vm203_vm15 = vcmp.lt.s32.totalorder %v2982_v63, 0 }
  0x8d   :  { %v97_v5 = vand.u32 2147483647, %v2984_v2  ;;  %v100_v6 = vand.u32 2139095040, %v2984_v2  ;;  %vm99_vm0 = vcmp.lt.s32.totalorder %v2984_v2, 0 }
  0x8e   :  { %v205_v7 = vshrl.u32 %v204_v4, 23  ;;  %v208_v8 = vand.u32 8388607, %v201_v3  ;;  %v91_v9 = vpop.permute.xlu1 %90  ;;  %vm3078_vm14 = vcmp.le.f32.partialorder %v201_v3, 0.7853982 }
  0x8f   :  { %v101_v11 = vshrl.u32 %v100_v6, 23  ;;  %v104_v12 = vand.u32 8388607, %v97_v5  ;;  %v2994_v13 = vadd.f32 %v91_v9, %v68_v1  ;;  %v86_v15 = vpop.permute.xlu0 %85 }
  0x90   :  { %v2171_v14 = vadd.s32 4294967169, %v205_v7  ;;  %v209_v16 = vor.u32 8388608, %v208_v8  ;;  %v2998_v23 = vadd.f32 %v86_v15, %v67_v10 }
  0x91   :  { %v2167_v17 = vadd.s32 4294967169, %v101_v11  ;;  %v105_v19 = vor.u32 8388608, %v104_v12  ;;  %v412_v20 = vand.u32 2139095040, %v2994_v13  ;;  %v409_v22 = vand.u32 2147483647, %v2994_v13 }
  0x92   :  { %v211_v18 = vadd.s32 1, %v2171_v14  ;;  %v3000_v26 = vshll.u32 %v209_v16, 8  ;;  %v308_v34 = vand.u32 2139095040, %v2998_v23 }
  0x93   :  { %v107_v21 = vadd.s32 1, %v2167_v17  ;;  %v413_v24 = vshrl.u32 %v412_v20, 23  ;;  %v3002_v30 = vshll.u32 %v105_v19, 8  ;;  %v3008_v33 = vand.u32 8388607, %v409_v22 }
  0x94   :  { %vm212_vm2 = vcmp.gt.s32.totalorder %v211_v18, 0 }
  0x95   :  { %v213_v25 = vsel %vm212_vm2, %v211_v18, 0  ;;  %vm108_vm3 = vcmp.gt.s32.totalorder %v107_v21, 0  ;;  %v3004_v32 = vadd.s32 4294967169, %v413_v24  ;;  %vm3105_vm2 = vcmp.le.f32.partialorder %v97_v5, 0.7853982 }
  0x96   :  { %v214_v27 = vshrl.u32 %v213_v25, 5  ;;  %v215_v28 = vand.u32 31, %v213_v25  ;;  %v109_v29 = vsel %vm108_vm3, %v107_v21, 0 }
  0x97   :  { %v111_v31 = vand.u32 31, %v109_v29  ;;  %v3016_v46 = vshrl.u32 %v109_v29, 5 }
  0x98   :  { %v216_v35 = vsub.s32 32, %v215_v28  ;;  %v218_v37 = vshll.u32 %v2609_v36, %v215_v28  ;;  %v221_v39 = vshll.u32 %v2610_v38, %v215_v28  ;;  %v224_v41 = vshll.u32 %v2611_v40, %v215_v28 }
  0x99   :  { %v227_v43 = vshll.u32 %v2612_v42, %v215_v28  ;;  %v230_v45 = vshll.u32 %v2613_v44, %v215_v28  ;;  %vm233_vm4 = vcmp.lt.s32.totalorder %v214_v27, 1  ;;  %vm234_vm5 = vcmp.lt.s32.totalorder %v214_v27, 2 }
  0x9a   :  { %v217_v47 = vshrl.u32 %v2609_v36, %v216_v35  ;;  %v219_v48 = vshrl.u32 %v2610_v38, %v216_v35  ;;  %v222_v49 = vshrl.u32 %v2611_v40, %v216_v35  ;;  %v225_v50 = vshrl.u32 %v2612_v42, %v216_v35 }
  0x9b   :  { %v228_v51 = vshrl.u32 %v2613_v44, %v216_v35  ;;  %v231_v53 = vshrl.u32 %v2614_v52, %v216_v35  ;;  %vm236_vm6 = vcmp.lt.s32.totalorder %v214_v27, 4  ;;  %v112_v57 = vsub.s32 32, %v111_v31 }
  0x9c   :  { %v220_v54 = vor.u32 %v219_v48, %v218_v37  ;;  %v223_v55 = vor.u32 %v222_v49, %v221_v39  ;;  %v226_v56 = vor.u32 %v225_v50, %v224_v41  ;;  %vm235_vm7 = vcmp.lt.s32.totalorder %v214_v27, 3 }
  0x9d   :  { %v229_v58 = vor.u32 %v228_v51, %v227_v43  ;;  %v232_v59 = vor.u32 %v231_v53, %v230_v45  ;;  %v114_v60 = vshll.u32 %v2609_v36, %v111_v31  ;;  %v117_v8 = vshll.u32 %v2610_v38, %v111_v31 }
  0x9e   :  { %v237_v61 = vsel %vm233_vm4, %v217_v47, %v220_v54  ;;  %v238_v62 = vsel %vm236_vm6, %v226_v56, 2102212464  ;;  %v241_v0 = vsel %vm233_vm4, %v220_v54, %v223_v55  ;;  %v245_v1 = vsel %vm233_vm4, %v223_v55, %v226_v56 }
  0x9f   :  { %v239_v4 = vsel %vm235_vm7, %v223_v55, %v238_v62  ;;  %v242_v6 = vsel %vm236_vm6, %v229_v58, 920167782  ;;  %v246_v7 = vsel %vm236_vm6, %v232_v59, 1326507024  ;;  %v113_v11 = vshrl.u32 %v2609_v36, %v112_v57 }
  0xa0   :  { %v243_v9 = vsel %vm235_vm7, %v226_v56, %v242_v6  ;;  %v247_v10 = vsel %vm235_vm7, %v229_v58, %v246_v7  ;;  %v115_v12 = vshrl.u32 %v2610_v38, %v112_v57  ;;  %v240_v14 = vsel %vm234_vm5, %v237_v61, %v239_v4 }
  0xa1   :  { %v244_v15 = vsel %vm234_vm5, %v241_v0, %v243_v9  ;;  %v248_v16 = vsel %vm234_vm5, %v245_v1, %v247_v10  ;;  %v118_v17 = vshrl.u32 %v2611_v40, %v112_v57  ;;  %v120_v28 = vshll.u32 %v2611_v40, %v111_v31 }
  0xa2   :  { %v3036_v18 = vmul.u32.u64.low %v3000_v26, %v248_v16  ;;  %v3037_v19 = vmul.u32.u64.high %v3000_v26, %v248_v16, %v3036_v18  ;;  %v3040_v20 = vmul.u32.u64.low %v3000_v26, %v244_v15  ;;  %v3041_v21 = vmul.u32.u64.high %v3000_v26, %v244_v15, %v3040_v20 }
  0xa3   :  { %v116_v24 = vor.u32 %v115_v12, %v114_v60  ;;  %v119_v25 = vor.u32 %v118_v17, %v117_v8  ;;  %v121_v29 = vshrl.u32 %v2612_v42, %v112_v57  ;;  %v123_v35 = vshll.u32 %v2612_v42, %v111_v31 }
  0xa4   :  { %v124_v27 = vshrl.u32 %v2613_v44, %v112_v57  ;;  %v126_v37 = vshll.u32 %v2613_v44, %v111_v31  ;;  %v127_v39 = vshrl.u32 %v2614_v52, %v112_v57  ;;  %v256_v41 = vmul.u32 %v3000_v26, %v240_v14 }
  0xa5   :  { %v122_v43 = vor.u32 %v121_v29, %v120_v28  ;;  %vm129_vm8 = vcmp.lt.s32.totalorder %v3016_v46, 1  ;;  %vm130_vm9 = vcmp.lt.s32.totalorder %v3016_v46, 2  ;;  %vm258_vm10 = vc.u32 %v3037_v19, %v3040_v20 }
  0xa6   :  { %v259_v45 = vadd.s32 1, %v3041_v21  ;;  %v125_v47 = vor.u32 %v124_v27, %v123_v35  ;;  %vm131_vm11 = vcmp.lt.s32.totalorder %v3016_v46, 3  ;;  %v128_v48 = vor.u32 %v127_v39, %v126_v37 }
  0xa7   :  { %vm132_vm12 = vcmp.lt.s32.totalorder %v3016_v46, 4  ;;  %v133_v31 = vsel %vm129_vm8, %v113_v11, %v116_v24  ;;  %v137_v49 = vsel %vm129_vm8, %v116_v24, %v119_v25  ;;  %v141_v53 = vsel %vm129_vm8, %v119_v25, %v122_v43 }
  0xa8   :  { %v260_v50 = vsel %vm258_vm10, %v259_v45, %v3041_v21  ;;  %v134_v26 = vsel %vm132_vm12, %v122_v43, 2102212464  ;;  %v138_v51 = vsel %vm132_vm12, %v125_v47, 920167782  ;;  %v142_v57 = vsel %vm132_vm12, %v128_v48, 1326507024 }
  0xa9   :  { %v261_v54 = vadd.s32 %v260_v50, %v256_v41  ;;  %v135_v55 = vsel %vm131_vm11, %v119_v25, %v134_v26  ;;  %v139_v56 = vsel %vm131_vm11, %v122_v43, %v138_v51  ;;  %v143_v60 = vsel %vm131_vm11, %v125_v47, %v142_v57 }
  0xaa   :  { %v136_v58 = vsel %vm130_vm9, %v133_v31, %v135_v55  ;;  %v140_v59 = vsel %vm130_vm9, %v137_v49, %v139_v56  ;;  %v419_v61 = vadd.s32 1, %v3004_v32  ;;  %v144_v0 = vsel %vm130_vm9, %v141_v53, %v143_v60 }
  0xab   :  { %v262_v62 = vadd.s32 536870912, %v261_v54  ;;  %v3065_v1 = vmul.u32.u64.low %v3002_v30, %v140_v59  ;;  %v3066_v4 = vmul.u32.u64.high %v3002_v30, %v140_v59, %v3065_v1  ;;  %v417_v8 = vor.u32 8388608, %v3008_v33 }
  0xac   :  { %v3070_v6 = vmul.u32.u64.low %v3002_v30, %v144_v0  ;;  %v3071_v7 = vmul.u32.u64.high %v3002_v30, %v144_v0, %v3070_v6  ;;  %vm420_vm13 = vcmp.gt.s32.totalorder %v419_v61, 0  ;;  %v309_v32 = vshrl.u32 %v308_v34, 23 }
  0xad   :  { %v263_v9 = vshrl.u32 %v262_v62, 30  ;;  %v421_v10 = vsel %vm420_vm13, %v419_v61, 0  ;;  %v152_v11 = vmul.u32 %v3002_v30, %v136_v58  ;;  %v155_v33 = vadd.s32 1, %v3066_v4 }
  0xae   :  { %v423_v12 = vand.u32 31, %v421_v10  ;;  %v305_v16 = vand.u32 2147483647, %v2998_v23  ;;  %v257_v17 = vadd.s32 %v3040_v20, %v3037_v19  ;;  %vm154_vm1 = vc.u32 %v3071_v7, %v3065_v1 }
  0xaf   :  { %v264_v14 = vshll.u32 %v263_v9, 30  ;;  %v287_v15 = vsub.s32 4, %v263_v9  ;;  %v3090_v34 = vshll.u32 %v417_v8, 8  ;;  %v156_v30 = vsel %vm154_vm1, %v155_v33, %v3066_v4 }
  0xb0   :  { %v424_v3 = vsub.s32 32, %v423_v12  ;;  %v426_v21 = vshll.u32 %v2609_v36, %v423_v12  ;;  %v3096_v24 = vadd.s32 4294967169, %v309_v32  ;;  %v157_v19 = vadd.s32 %v156_v30, %v152_v11 }
  0xb1   :  { %v3092_v18 = vsub.s32 %v261_v54, %v264_v14  ;;  %v288_v25 = vsel %vm203_vm15, %v287_v15, %v263_v9  ;;  %v429_v28 = vshll.u32 %v2610_v38, %v423_v12  ;;  %v422_v27 = vshrl.u32 %v421_v10, 5 }
  0xb2   :  { %v427_v20 = vshrl.u32 %v2610_v38, %v424_v3  ;;  %v430_v37 = vshrl.u32 %v2611_v40, %v424_v3  ;;  %v432_v39 = vshll.u32 %v2611_v40, %v423_v12  ;;  %v158_v41 = vadd.s32 536870912, %v157_v19 }
  0xb3   :  { %v267_v29 = vsub.s32 0, %v3092_v18  ;;  %v433_v43 = vshrl.u32 %v2612_v42, %v424_v3  ;;  %v435_v45 = vshll.u32 %v2612_v42, %v423_v12  ;;  %v3115_v47 = vand.u32 8388607, %v305_v16 }
  0xb4   :  { %v290_v5 = vsel %vm3078_vm14, 0, %v288_v25  ;;  %v428_v31 = vor.u32 %v427_v20, %v426_v21  ;;  %v436_v49 = vshrl.u32 %v2613_v44, %v424_v3  ;;  %v159_v50 = vshrl.u32 %v158_v41, 30 }
  0xb5   :  { %v2172_v48 = vmin.u32 %v267_v29, %v3092_v18  ;;  %v431_v26 = vor.u32 %v430_v37, %v429_v28  ;;  %v438_v51 = vshll.u32 %v2613_v44, %v423_v12  ;;  %v439_v53 = vshrl.u32 %v2614_v52, %v424_v3 }
  0xb6   :  { %v434_v55 = vor.u32 %v433_v43, %v432_v39  ;;  %v437_v56 = vor.u32 %v436_v49, %v435_v45  ;;  %vm441_vm3 = vcmp.lt.s32.totalorder %v422_v27, 1  ;;  %v160_v57 = vshll.u32 %v159_v50, 30 }
  0xb7   :  { %v269_v54 = vclz %v2172_v48  ;;  %v183_v58 = vsub.s32 4, %v159_v50  ;;  %v425_v59 = vshrl.u32 %v2609_v36, %v424_v3  ;;  %vm443_vm4 = vcmp.lt.s32.totalorder %v422_v27, 3 }
  0xb8   :  { %v440_v61 = vor.u32 %v439_v53, %v438_v51  ;;  %vm442_vm5 = vcmp.lt.s32.totalorder %v422_v27, 2  ;;  %vm444_vm6 = vcmp.lt.s32.totalorder %v422_v27, 4  ;;  %v3124_v62 = vsub.s32 %v157_v19, %v160_v57 }
  0xb9   :  { %v2173_v60 = vadd.s32 4294967294, %v269_v54  ;;  %v446_v0 = vsel %vm444_vm6, %v434_v55, 2102212464  ;;  %v449_v4 = vsel %vm441_vm3, %v428_v31, %v431_v26  ;;  %v450_v6 = vsel %vm444_vm6, %v437_v56, 920167782 }
  0xba   :  { %v294_v8 = vadd.s32 3, %v290_v5  ;;  %v184_v9 = vsel %vm99_vm0, %v183_v58, %v159_v50  ;;  %v451_v10 = vsel %vm443_vm4, %v434_v55, %v450_v6  ;;  %v163_v11 = vsub.s32 0, %v3124_v62 }
  0xbb   :  { %vm2174_vm7 = vcmp.lt.s32.totalorder %v2173_v60, 0  ;;  %v445_v12 = vsel %vm441_vm3, %v425_v59, %v428_v31  ;;  %v447_v14 = vsel %vm443_vm4, %v431_v26, %v446_v0  ;;  %v452_v30 = vsel %vm442_vm5, %v449_v4, %v451_v10 }
  0xbc   :  { %v272_v32 = vsel %vm2174_vm7, 0, %v2173_v60  ;;  %v2168_v21 = vmin.u32 %v163_v11, %v3124_v62  ;;  %v186_v25 = vsel %vm3105_vm2, 0, %v184_v9  ;;  %v453_v19 = vsel %vm441_vm3, %v431_v26, %v434_v55 }
  0xbd   :  { %v273_v15 = vsub.s32 32, %v272_v32  ;;  %v274_v33 = vshll.u32 %v3092_v18, %v272_v32  ;;  %v277_v3 = vsub.s32 4294967266, %v272_v32  ;;  %v454_v20 = vsel %vm444_vm6, %v440_v61, 1326507024 }
  0xbe   :  { %v448_v37 = vsel %vm442_vm5, %v445_v12, %v447_v14  ;;  %v455_v39 = vsel %vm443_vm4, %v437_v56, %v454_v20  ;;  %v165_v41 = vclz %v2168_v21  ;;  %v315_v26 = vadd.s32 1, %v3096_v24 }
  0xbf   :  { %v275_v28 = vshrl.u32 %v257_v17, %v273_v15  ;;  %v278_v29 = vadd.s32 127, %v277_v3  ;;  %v456_v18 = vsel %vm442_vm5, %v453_v19, %v455_v39  ;;  %v313_v17 = vor.u32 8388608, %v3115_v47  ;;  %v3180_v15 = vpop.permute.xlu1 %534 }
  0xc0   :  { %v3146_v43 = vmul.u32.u64.low %v3090_v34, %v452_v30  ;;  %v3147_v45 = vmul.u32.u64.high %v3090_v34, %v452_v30, %v3146_v43  ;;  %v3150_v31 = vmul.u32.u64.low %v3090_v34, %v456_v18  ;;  %v3151_v49 = vmul.u32.u64.high %v3090_v34, %v456_v18, %v3150_v31 }
  0xc1   :  { %v276_v48 = vor.u32 %v275_v28, %v274_v33  ;;  %v279_v5 = vshll.u32 %v278_v29, 23  ;;  %v2169_v50 = vadd.s32 4294967294, %v165_v41  ;;  %v190_v54 = vadd.s32 3, %v186_v25 }
  0xc2   :  { %v464_v27 = vmul.u32 %v3090_v34, %v448_v37  ;;  %v153_v55 = vadd.s32 %v3065_v1, %v3071_v7  ;;  %vm411_vm9 = vcmp.lt.s32.totalorder %v2994_v13, 0  ;;  %v467_v56 = vadd.s32 1, %v3147_v45 }
  0xc3   :  { %v280_v51 = vor.u32 4788187, %v279_v5  ;;  %v283_v53 = vcvt.s32.f32 %v276_v48  ;;  %vm2170_vm8 = vcmp.lt.s32.totalorder %v2169_v50, 0  ;;  %vm316_vm10 = vcmp.gt.s32.totalorder %v315_v26, 0 }
  0xc4   :  { %v3160_v58 = vand.u32 3, %v294_v8  ;;  %v168_v47 = vsel %vm2170_vm8, 0, %v2169_v50  ;;  %vm3164_vm11 = vcmp.le.f32.partialorder %v409_v22, 0.7853982  ;;  %vm466_vm12 = vc.u32 %v3151_v49, %v3146_v43 }
  0xc5   :  { %v281_v57 = vand.u32 2147483647, %v280_v51  ;;  %v169_v34 = vsub.s32 32, %v168_v47  ;;  %v170_v1 = vshll.u32 %v3124_v62, %v168_v47  ;;  %v173_v7 = vsub.s32 4294967266, %v168_v47 }
  0xc6   :  { %v468_v59 = vsel %vm466_vm12, %v467_v56, %v3147_v45  ;;  %v3171_v61 = vand.u32 3, %v190_v54  ;;  %v317_v4 = vsel %vm316_vm10, %v315_v26, 0  ;;  %v3173_v22 = vshll.u32 %v313_v17, 8 }
  0xc7   :  { %v284_v60 = vmul.f32 %v283_v53, %v281_v57  ;;  %v469_v0 = vadd.s32 %v468_v59, %v464_v27  ;;  %v171_v6 = vshrl.u32 %v153_v55, %v169_v34  ;;  %v174_v8 = vadd.s32 127, %v173_v7 }
  0xc8   :  { %v319_v9 = vand.u32 31, %v317_v4  ;;  %v2365_v10 = vpop.f32.mrf.mxu0  ;;  %v2375_v32 = vpop.f32.mrf.mxu1  ;;  %v3176_v12 = vadd.s32 %v3146_v43, %v3151_v49  ;;  %v3178_v14 = vshrl.u32 %v317_v4, 5  ;;  %vm3328_vm3 = vcmp.le.f32.partialorder %v305_v16, 0.7853982 }
  0xc9   :  { %v285_v11 = vxor.u32 2147483648, %v284_v60  ;;  %v470_v62 = vadd.s32 536870912, %v469_v0  ;;  %v172_v33 = vor.u32 %v171_v6, %v170_v1  ;;  %v175_v3 = vshll.u32 %v174_v8, 23 }
  0xca   :  { %v320_v30 = vsub.s32 32, %v319_v9  ;;  %v3183_v21 = vadd.f32 %v2365_v10, %v3180_v15  ;;  %v3185_v25 = vpop.f32.mrf.mxu0  ;;  %v3187_v19 = vpop.f32.mrf.mxu1  ;;  %v322_v29 = vshll.u32 %v2609_v36, %v319_v9  ;;  %v3193_v37 = vadd.f32 %v2375_v32, %v3180_v15 }
  0xcb   :  { %v286_v20 = vsel %vm203_vm15, %v285_v11, %v284_v60  ;;  %v471_v28 = vshrl.u32 %v470_v62, 30  ;;  %v176_v41 = vor.u32 4788187, %v175_v3  ;;  %v179_v18 = vcvt.s32.f32 %v172_v33 }
  0xcc   :  { %v289_v39 = vsel %vm3078_vm14, %v2982_v63, %v286_v20  ;;  %v325_v43 = vshll.u32 %v2610_v38, %v319_v9  ;;  %v323_v5 = vshrl.u32 %v2610_v38, %v320_v30  ;;  %v328_v31 = vshll.u32 %v2611_v40, %v319_v9 }
  0xcd   :  { %v472_v45 = vshll.u32 %v471_v28, 30  ;;  %v495_v48 = vsub.s32 4, %v471_v28  ;;  %v3201_v49 = vpop.f32.mrf.mxu0  ;;  %v3203_v50 = vpop.f32.mrf.mxu1  ;;  %v177_v17 = vand.u32 2147483647, %v176_v41  ;;  %v321_v26 = vshrl.u32 %v2609_v36, %v320_v30 }
  0xce   :  { %v326_v46 = vshrl.u32 %v2611_v40, %v320_v30  ;;  %v329_v51 = vshrl.u32 %v2612_v42, %v320_v30  ;;  %2548 = vcosq.f32 %v289_v39  ;;  %v331_v38 = vshll.u32 %v2612_v42, %v319_v9 }
  0xcf   :  { %v3208_v53 = vsub.s32 %v469_v0, %v472_v45  ;;  %v496_v54 = vsel %vm411_vm9, %v495_v48, %v471_v28  ;;  %v3213_v27 = vpop.f32.mrf.mxu0  ;;  %v3215_v55 = vpop.f32.mrf.mxu1  ;;  %2550 = vsinq.f32 %v289_v39  ;;  %v180_v56 = vmul.f32 %v179_v18, %v177_v17 }
  0xd0   :  { %v498_v36 = vsel %vm3164_vm11, 0, %v496_v54  ;;  %v324_v40 = vor.u32 %v323_v5, %v322_v29  ;;  %v327_v47 = vor.u32 %v326_v46, %v325_v43  ;;  %v332_v34 = vshrl.u32 %v2613_v44, %v320_v30  ;;  %v3253_v28 = vpop.permute.xlu0 %529 }
  0xd1   :  { %v475_v57 = vsub.s32 0, %v3208_v53  ;;  %v334_v1 = vshll.u32 %v2613_v44, %v319_v9  ;;  %v181_v7 = vxor.u32 2147483648, %v180_v56  ;;  %v330_v59 = vor.u32 %v329_v51, %v328_v31 }
  0xd2   :  { %v335_v42 = vshrl.u32 %v2614_v52, %v320_v30  ;;  %vm337_vm13 = vcmp.lt.s32.totalorder %v3178_v14, 1  ;;  %v3224_v60 = vpop.f32.mrf.mxu0  ;;  %v3226_v0 = vpop.f32.mrf.mxu1  ;;  %v333_v6 = vor.u32 %v332_v34, %v331_v38  ;;  %vm338_vm14 = vcmp.lt.s32.totalorder %v3178_v14, 2 }
  0xd3   :  { %v2180_v4 = vmin.u32 %v475_v57, %v3208_v53  ;;  %vm339_vm15 = vcmp.lt.s32.totalorder %v3178_v14, 3  ;;  %v182_v44 = vsel %vm99_vm0, %v181_v7, %v180_v56  ;;  %vm340_vm1 = vcmp.lt.s32.totalorder %v3178_v14, 4 }
  0xd4   :  { %v336_v8 = vor.u32 %v335_v42, %v334_v1  ;;  %v341_v52 = vsel %vm337_vm13, %v321_v26, %v324_v40  ;;  %v3236_v9 = vpop.f32.mrf.mxu0  ;;  %v3238_v10 = vpop.f32.mrf.mxu1  ;;  %v185_v32 = vsel %vm3105_vm2, %v2984_v2, %v182_v44  ;;  %v342_v62 = vsel %vm340_vm1, %v330_v59, 2102212464 }
  0xd5   :  { %v477_v11 = vclz %v2180_v4  ;;  %v345_v33 = vsel %vm337_vm13, %v324_v40, %v327_v47  ;;  %2552 = vcosq.f32 %v185_v32  ;;  %v3247_v3 = vadd.s32 3, %v498_v36  ;;  %v3301_v42 = vpop.permute.xlu0 %539 }
  0xd6   :  { %v343_v30 = vsel %vm339_vm15, %v327_v47, %v342_v62  ;;  %v346_v20 = vsel %vm340_vm1, %v333_v6, 920167782  ;;  %2554 = vsinq.f32 %v185_v32  ;;  %v349_v39 = vsel %vm337_vm13, %v327_v47, %v330_v59 }
  0xd7   :  { %v2181_v35 = vadd.s32 4294967294, %v477_v11  ;;  %v347_v29 = vsel %vm339_vm15, %v330_v59, %v346_v20  ;;  %v3259_v41 = vpop.f32.mrf.mxu0  ;;  %v3261_v18 = vpop.f32.mrf.mxu1  ;;  %v344_v43 = vsel %vm338_vm14, %v341_v52, %v343_v30  ;;  %v350_v48 = vsel %vm340_vm1, %v336_v8, 1326507024 }
  0xd8   :  { %v348_v45 = vsel %vm338_vm14, %v345_v33, %v347_v29  ;;  %v650_v5 = vmax.f32 %v3183_v21, 0.0  ;;  %v351_v31 = vsel %vm339_vm15, %v333_v6, %v350_v48  ;;  %v748_v56 = vmax.f32 %v3193_v37, 0.0 }
  0xd9   :  { %vm2182_vm0 = vcmp.lt.s32.totalorder %v2181_v35, 0  ;;  %v3273_v17 = vmul.u32.u64.low %v3173_v22, %v348_v45  ;;  %v3274_v26 = vmul.u32.u64.high %v3173_v22, %v348_v45, %v3273_v17  ;;  %v3276_v46 = vpop.f32.mrf.mxu0  ;;  %v3278_v51 = vpop.f32.mrf.mxu1  ;;  %v352_v38 = vsel %vm338_vm14, %v349_v39, %v351_v31 }
  0xda   :  { %v480_v54 = vsel %vm2182_vm0, 0, %v2181_v35  ;;  %v631_v21 = vadd.f32 %v3185_v25, %v3253_v28  ;;  %v729_v47 = vadd.f32 %v3187_v19, %v3253_v28  ;;  %v360_v37 = vmul.u32 %v3173_v22, %v344_v43  ;;  %v3299_v25 = vpop.permute.xlu1 %544 }
  0xdb   :  { %v481_v36 = vsub.s32 32, %v480_v54  ;;  %v482_v40 = vshll.u32 %v3208_v53, %v480_v54  ;;  %v485_v57 = vsub.s32 4294967266, %v480_v54  ;;  %v3288_v34 = vpop.f32.mrf.mxu0  ;;  %v3290_v1 = vpop.f32.mrf.mxu1  ;;  %v363_v44 = vadd.s32 1, %v3274_v26 }
  0xdc   :  { %v3292_v7 = vpop.eup %2548  ;;  %v3295_v14 = vmul.u32.u64.low %v3173_v22, %v352_v38  ;;  %v3296_v59 = vmul.u32.u64.high %v3173_v22, %v352_v38, %v3295_v14  ;;  %v649_v53 = vmax.f32 %v631_v21, 0.0  ;;  %v747_v8 = vmax.f32 %v729_v47, 0.0 }
  0xdd   :  { %v3303_v4 = vpop.eup %2550  ;;  %v483_v19 = vshrl.u32 %v3176_v12, %v481_v36  ;;  %v486_v6 = vadd.s32 127, %v485_v57  ;;  %v3307_v52 = vpop.f32.mrf.mxu0  ;;  %v646_v22 = vadd.f32 %v3201_v49, %v3299_v25  ;;  %v744_v11 = vadd.f32 %v3203_v50, %v3299_v25 }
  0xde   :  { %v3309_v32 = vpop.f32.mrf.mxu1  ;;  %v641_v62 = vadd.f32 %v3213_v27, %v3301_v42  ;;  %v739_v12 = vadd.f32 %v3215_v55, %v3301_v42  ;;  %vm307_vm2 = vcmp.lt.s32.totalorder %v2998_v23, 0  ;;  %v752_v20 = vadd.f32 %v748_v56, %v650_v5 }
  0xdf   :  { %v484_v33 = vor.u32 %v483_v19, %v482_v40  ;;  %v487_v30 = vshll.u32 %v486_v6, 23  ;;  %v832_v35 = vadd.f32 %v3224_v60, %v3180_v15  ;;  %v3322_v29 = vpop.f32.mrf.mxu0  ;;  %vm362_vm4 = vc.u32 %v3296_v59, %v3273_v17 }
  0xe0   :  { %v3324_v49 = vpop.f32.mrf.mxu1  ;;  %v751_v27 = vadd.f32 %v747_v8, %v649_v53  ;;  %v652_v55 = vmax.f32 %v646_v22, 0.0  ;;  %v750_v39 = vmax.f32 %v744_v11, 0.0  ;;  %v3334_v45 = vadd.s32 %v3273_v17, %v3296_v59 }
  0xe1   :  { %v488_v43 = vor.u32 4788187, %v487_v30  ;;  %v364_v60 = vsel %vm362_vm4, %v363_v44, %v3274_v26  ;;  %v651_v48 = vmax.f32 %v641_v62, 0.0  ;;  %v3337_v5 = vpop.f32.mrf.mxu0  ;;  %v491_v16 = vcvt.s32.f32 %v484_v33 }
  0xe2   :  { %v3339_v31 = vpop.f32.mrf.mxu1  ;;  %v365_v54 = vadd.s32 %v364_v60, %v360_v37  ;;  %v749_v38 = vmax.f32 %v739_v12, 0.0  ;;  %v846_v56 = vmax.f32 %v832_v35, 0.0  ;;  %v3341_v21 = vpop.eup %2552  ;;  %v930_v40 = vadd.f32 %v3226_v0, %v3180_v15 }
  0xe3   :  { %v489_v36 = vand.u32 2147483647, %v488_v43  ;;  %v827_v17 = vadd.f32 %v3236_v9, %v3253_v28  ;;  %v925_v26 = vadd.f32 %v3238_v10, %v3253_v28  ;;  %v3349_v57 = vpop.f32.mrf.mxu0  ;;  %v3353_v14 = vpop.eup %2554  ;;  %v754_v37 = vadd.f32 %v750_v39, %v652_v55 }
  0xe4   :  { %v3351_v47 = vpop.f32.mrf.mxu1  ;;  %v366_v59 = vadd.s32 536870912, %v365_v54  ;;  %v850_v53 = vadd.f32 %v846_v56, %v752_v20  ;;  %v842_v19 = vadd.f32 %v3259_v41, %v3299_v25  ;;  %v753_v0 = vadd.f32 %v749_v38, %v651_v48 }
  0xe5   :  { %v492_v6 = vmul.f32 %v491_v16, %v489_v36  ;;  %v944_v44 = vmax.f32 %v930_v40, 0.0  ;;  %v845_v8 = vmax.f32 %v827_v17, 0.0  ;;  %v3357_v9 = vpop.f32.mrf.mxu0  ;;  %v940_v62 = vadd.f32 %v3261_v18, %v3299_v25 }
  0xe6   :  { %v3359_v22 = vpop.f32.mrf.mxu1  ;;  %v367_v10 = vshrl.u32 %v366_v59, 30  ;;  %v848_v11 = vmax.f32 %v842_v19, 0.0  ;;  %v837_v12 = vadd.f32 %v3276_v46, %v3301_v42  ;;  %v943_v20 = vmax.f32 %v925_v26, 0.0 }
  0xe7   :  { %v493_v33 = vxor.u32 2147483648, %v492_v6  ;;  %v849_v30 = vadd.f32 %v845_v8, %v751_v27  ;;  %v935_v41 = vadd.f32 %v3278_v51, %v3301_v42  ;;  %v3367_v35 = vpop.f32.mrf.mxu0  ;;  %v948_v60 = vadd.f32 %v944_v44, %v850_v53 }
  0xe8   :  { %v3369_v55 = vpop.f32.mrf.mxu1  ;;  %v368_v39 = vshll.u32 %v367_v10, 30  ;;  %v391_v43 = vsub.s32 4, %v367_v10  ;;  %v852_v48 = vadd.f32 %v848_v11, %v754_v37  ;;  %v946_v38 = vmax.f32 %v940_v62, 0.0 }
  0xe9   :  { %v494_v18 = vsel %vm411_vm9, %v493_v33, %v492_v6  ;;  %v947_v16 = vadd.f32 %v943_v20, %v849_v30  ;;  %v847_v46 = vmax.f32 %v837_v12, 0.0  ;;  %v3373_v56 = vpop.f32.mrf.mxu0  ;;  %v945_v17 = vmax.f32 %v935_v41, 0.0 }
  0xea   :  { %v3375_v27 = vpop.f32.mrf.mxu1  ;;  %v497_v51 = vsel %vm3164_vm11, %v2994_v13, %v494_v18  ;;  %v3380_v36 = vsub.s32 %v365_v54, %v368_v39  ;;  %v392_v40 = vsel %vm307_vm2, %v391_v43, %v367_v10  ;;  %v950_v59 = vadd.f32 %v946_v38, %v852_v48 }
  0xeb   :  { %v394_v26 = vsel %vm3328_vm3, 0, %v392_v40  ;;  %v851_v37 = vadd.f32 %v847_v46, %v753_v0  ;;  %v1028_v53 = vadd.f32 %v3288_v34, %v3180_v15  ;;  %v3388_v19 = vpop.f32.mrf.mxu0  ;;  %2556 = vcosq.f32 %v497_v51 }
  0xec   :  { %v3390_v6 = vpop.f32.mrf.mxu1  ;;  %v371_v24 = vsub.s32 0, %v3380_v36  ;;  %v398_v54 = vadd.s32 3, %v394_v26  ;;  %v1126_v44 = vadd.f32 %v3290_v1, %v3180_v15  ;;  %2558 = vsinq.f32 %v497_v51 }
  0xed   :  { %v1042_v8 = vmax.f32 %v1028_v53, 0.0  ;;  %v1023_v10 = vadd.f32 %v3307_v52, %v3253_v28  ;;  %v1121_v0 = vadd.f32 %v3309_v32, %v3253_v28  ;;  %v3399_v34 = vpop.f32.mrf.mxu0  ;;  %v949_v33 = vadd.f32 %v945_v17, %v851_v37 }
  0xee   :  { %v3401_v11 = vpop.f32.mrf.mxu1  ;;  %v2176_v62 = vmin.u32 %v371_v24, %v3380_v36  ;;  %v3404_v12 = vand.u32 3, %v398_v54  ;;  %v1038_v1 = vadd.f32 %v3322_v29, %v3299_v25  ;;  %v1140_v20 = vmax.f32 %v1126_v44, 0.0 }
  0xef   :  { %v1046_v30 = vadd.f32 %v1042_v8, %v948_v60  ;;  %v1041_v41 = vmax.f32 %v1023_v10, 0.0  ;;  %v1136_v52 = vadd.f32 %v3324_v49, %v3299_v25  ;;  %v3410_v39 = vpop.f32.mrf.mxu0  ;;  %v1033_v18 = vadd.f32 %v3337_v5, %v3301_v42 }
  0xf0   :  { %v3412_v32 = vpop.f32.mrf.mxu1  ;;  %v373_v43 = vclz %v2176_v62  ;;  %v1044_v48 = vmax.f32 %v1038_v1, 0.0  ;;  %v1131_v38 = vadd.f32 %v3339_v31, %v3301_v42  ;;  %v1139_v60 = vmax.f32 %v1121_v0, 0.0 }
  0xf1   :  { %v1144_v46 = vadd.f32 %v1140_v20, %v1046_v30  ;;  %v1045_v29 = vadd.f32 %v1041_v41, %v947_v16  ;;  %v1224_v51 = vadd.f32 %v3349_v57, %v3180_v15  ;;  %v3420_v40 = vpop.f32.mrf.mxu0  ;;  %v1142_v37 = vmax.f32 %v1136_v52, 0.0 }
  0xf2   :  { %v3422_v49 = vpop.f32.mrf.mxu1  ;;  %v2177_v17 = vadd.s32 4294967294, %v373_v43  ;;  %v1048_v26 = vadd.f32 %v1044_v48, %v950_v59  ;;  %v1043_v53 = vmax.f32 %v1033_v18, 0.0  ;;  %v1141_v24 = vmax.f32 %v1131_v38, 0.0 }
  0xf3   :  { %v1238_v54 = vmax.f32 %v1224_v51, 0.0  ;;  %v1322_v5 = vadd.f32 %v3351_v47, %v3180_v15  ;;  %v1219_v31 = vadd.f32 %v3357_v9, %v3253_v28  ;;  %v3428_v16 = vpop.f32.mrf.mxu0  ;;  %v1143_v57 = vadd.f32 %v1139_v60, %v1045_v29 }
  0xf4   :  { %v3430_v44 = vpop.f32.mrf.mxu1  ;;  %vm2178_vm5 = vcmp.lt.s32.totalorder %v2177_v17, 0  ;;  %v1047_v8 = vadd.f32 %v1043_v53, %v949_v33  ;;  %v1317_v59 = vadd.f32 %v3359_v22, %v3253_v28  ;;  %v1146_v0 = vadd.f32 %v1142_v37, %v1048_v26 }
  0xf5   :  { %v376_v10 = vsel %vm2178_vm5, 0, %v2177_v17  ;;  %v1242_v62 = vadd.f32 %v1238_v54, %v1144_v46  ;;  %v1237_v1 = vmax.f32 %v1219_v31, 0.0  ;;  %v3434_v30 = vpop.f32.mrf.mxu0  ;;  %v1336_v52 = vmax.f32 %v1322_v5, 0.0 }
  0xf6   :  { %v3436_v47 = vpop.f32.mrf.mxu1  ;;  %v377_v20 = vsub.s32 32, %v376_v10  ;;  %v378_v9 = vshll.u32 %v3380_v36, %v376_v10  ;;  %v381_v41 = vsub.s32 4294967266, %v376_v10  ;;  %v1145_v43 = vadd.f32 %v1141_v24, %v1047_v8 }
  0xf7   :  { %v1241_v48 = vadd.f32 %v1237_v1, %v1143_v57  ;;  %v1335_v18 = vmax.f32 %v1317_v59, 0.0  ;;  %v1234_v33 = vadd.f32 %v3367_v35, %v3299_v25  ;;  %v1332_v46 = vadd.f32 %v3369_v55, %v3299_v25 }
  0xf8   :  { %v379_v22 = vshrl.u32 %v3334_v45, %v377_v20  ;;  %v382_v38 = vadd.s32 127, %v381_v41  ;;  %v1229_v29 = vadd.f32 %v3373_v56, %v3301_v42  ;;  %v2468_v60 = vpop.f32.mrf.mxu0  ;;  %v3446_v51 = vpop.f32.mrf.mxu1  ;;  %v1340_v17 = vadd.f32 %v1336_v52, %v1242_v62 }
  0xf9   :  { %v3448_v36 = vpop.eup %2556  ;;  %v1240_v26 = vmax.f32 %v1234_v33, 0.0  ;;  %v1327_v37 = vadd.f32 %v3375_v27, %v3301_v42  ;;  %v1420_v45 = vadd.f32 %v3388_v19, %v3180_v15  ;;  %v1339_v24 = vadd.f32 %v1335_v18, %v1241_v48 }
  0xfa   :  { %v3454_v35 = vpop.eup %2558  ;;  %v380_v53 = vor.u32 %v379_v22, %v378_v9  ;;  %v383_v55 = vshll.u32 %v382_v38, 23  ;;  %v1239_v54 = vmax.f32 %v1229_v29, 0.0  ;;  %v3456_v56 = vpop.f32.mrf.mxu0  ;;  %v1338_v57 = vmax.f32 %v1332_v46, 0.0 }
  0xfb   :  { %v3458_v5 = vpop.f32.mrf.mxu1  ;;  %v1244_v31 = vadd.f32 %v1240_v26, %v1146_v0  ;;  %v1434_v8 = vmax.f32 %v1420_v45, 0.0  ;;  %v1518_v59 = vadd.f32 %v3390_v6, %v3180_v15  ;;  %v1337_v62 = vmax.f32 %v1327_v37, 0.0 }
  0xfc   :  { %v384_v27 = vor.u32 4788187, %v383_v55  ;;  %v1243_v10 = vadd.f32 %v1239_v54, %v1145_v43  ;;  %v1415_v19 = vadd.f32 %v3399_v34, %v3253_v28  ;;  %v387_v1 = vcvt.s32.f32 %v380_v53 }
  0xfd   :  { %v1342_v20 = vadd.f32 %v1338_v57, %v1244_v31  ;;  %v1438_v9 = vadd.f32 %v1434_v8, %v1340_v17  ;;  %v1513_v41 = vadd.f32 %v3401_v11, %v3253_v28  ;;  %v2485_v52 = vpop.f32.mrf.mxu0  ;;  %v2495_v48 = vpop.f32.mrf.mxu1  ;;  %v1532_v18 = vmax.f32 %v1518_v59, 0.0 }
  0xfe   :  { %v385_v0 = vand.u32 2147483647, %v384_v27  ;;  %v1433_v33 = vmax.f32 %v1415_v19, 0.0  ;;  %v1430_v6 = vadd.f32 %v3410_v39, %v3299_v25  ;;  %v1341_v22 = vadd.f32 %v1337_v62, %v1243_v10 }
  0xff   :  { %v1531_v43 = vmax.f32 %v1513_v41, 0.0  ;;  %v1528_v38 = vadd.f32 %v3412_v32, %v3299_v25  ;;  %v1425_v34 = vadd.f32 %v3420_v40, %v3301_v42  ;;  %v1806_v46 = vpop.f32.mrf.mxu0  ;;  %v1904_v29 = vpop.f32.mrf.mxu1  ;;  %v1523_v37 = vadd.f32 %v3422_v49, %v3301_v42 }
 0x100   :  { %v388_v17 = vmul.f32 %v387_v1, %v385_v0  ;;  %v1437_v11 = vadd.f32 %v1433_v33, %v1339_v24  ;;  %v1436_v26 = vmax.f32 %v1430_v6, 0.0  ;;  %v1536_v45 = vadd.f32 %v1532_v18, %v1438_v9 }
 0x101   :  { %v1435_v53 = vmax.f32 %v1425_v34, 0.0  ;;  %v1616_v39 = vadd.f32 %v3428_v16, %v3180_v15  ;;  %v1714_v55 = vadd.f32 %v3430_v44, %v3180_v15  ;;  %v2488_v32 = vpop.f32.mrf.mxu0  ;;  %v2498_v54 = vpop.f32.mrf.mxu1  ;;  %v1534_v8 = vmax.f32 %v1528_v38, 0.0 }
 0x102   :  { %v389_v31 = vxor.u32 2147483648, %v388_v17  ;;  %v1535_v40 = vadd.f32 %v1531_v43, %v1437_v11  ;;  %v1440_v57 = vadd.f32 %v1436_v26, %v1342_v20  ;;  %v1533_v24 = vmax.f32 %v1523_v37, 0.0 }
 0x103   :  { %v1439_v59 = vadd.f32 %v1435_v53, %v1341_v22  ;;  %v1630_v27 = vmax.f32 %v1616_v39, 0.0  ;;  %v1611_v49 = vadd.f32 %v3434_v30, %v3253_v28  ;;  %v1816_v10 = vpop.f32.mrf.mxu0  ;;  %v1914_v62 = vpop.f32.mrf.mxu1  ;;  %v1728_v19 = vmax.f32 %v1714_v55, 0.0 }
 0x104   :  { %v390_v16 = vsel %vm307_vm2, %v389_v31, %v388_v17  ;;  %v1709_v44 = vadd.f32 %v3436_v47, %v3253_v28  ;;  %v1626_v1 = vadd.f32 %v2468_v60, %v3299_v25  ;;  %v1538_v9 = vadd.f32 %v1534_v8, %v1440_v57 }
 0x105   :  { %v393_v20 = vsel %vm3328_vm3, %v2998_v23, %v390_v16  ;;  %v1634_v41 = vadd.f32 %v1630_v27, %v1536_v45  ;;  %v1629_v0 = vmax.f32 %v1611_v49, 0.0  ;;  %v2505_v18 = vpop.f32.mrf.mxu0  ;;  %v2515_v30 = vpop.f32.mrf.mxu1  ;;  %v1537_v33 = vadd.f32 %v1533_v24, %v1439_v59 }
 0x106   :  { %2560 = vcosq.f32 %v393_v20  ;;  %v1632_v6 = vmax.f32 %v1626_v1, 0.0  ;;  %v1724_v22 = vadd.f32 %v3446_v51, %v3299_v25  ;;  %v1727_v47 = vmax.f32 %v1709_v44, 0.0 }
 0x107   :  { %2562 = vsinq.f32 %v393_v20  ;;  %v1633_v43 = vadd.f32 %v1629_v0, %v1535_v40  ;;  %v1621_v60 = vadd.f32 %v3456_v56, %v3301_v42  ;;  %v1719_v34 = vadd.f32 %v3458_v5, %v3301_v42  ;;  %v2002_v11 = vpop.f32.mrf.mxu0  ;;  %v2100_v26 = vpop.f32.mrf.mxu1 }
 0x108   :  { %v1636_v38 = vadd.f32 %v1632_v6, %v1538_v9  ;;  %v1730_v50 = vmax.f32 %v1724_v22, 0.0  ;;  %v1812_v17 = vadd.f32 %v2485_v52, %v3180_v15  ;;  %v1732_v37 = vadd.f32 %v1728_v19, %v1634_v41 }
 0x109   :  { %v1631_v45 = vmax.f32 %v1621_v60, 0.0  ;;  %v1910_v53 = vadd.f32 %v2495_v48, %v3180_v15  ;;  %v1807_v51 = vadd.f32 %v1806_v46, %v3253_v28  ;;  %v1731_v39 = vadd.f32 %v1727_v47, %v1633_v43  ;;  %v2508_v49 = vpop.f32.mrf.mxu0  ;;  %v2518_v48 = vpop.f32.mrf.mxu1 }
 0x10a   :  { %v1734_v55 = vadd.f32 %v1730_v50, %v1636_v38  ;;  %v1826_v31 = vmax.f32 %v1812_v17, 0.0  ;;  %v1905_v56 = vadd.f32 %v1904_v29, %v3253_v28  ;;  %v1729_v57 = vmax.f32 %v1719_v34, 0.0 }
 0x10b   :  { %v1635_v40 = vadd.f32 %v1631_v45, %v1537_v33  ;;  %v1825_v8 = vmax.f32 %v1807_v51, 0.0  ;;  %v1822_v5 = vadd.f32 %v2488_v32, %v3299_v25  ;;  %v1924_v52 = vmax.f32 %v1910_v53, 0.0  ;;  %v2012_v22 = vpop.f32.mrf.mxu0  ;;  %v2110_v43 = vpop.f32.mrf.mxu1 }
 0x10c   :  { %v1830_v59 = vadd.f32 %v1826_v31, %v1732_v37  ;;  %v1920_v24 = vadd.f32 %v2498_v54, %v3299_v25  ;;  %v1817_v27 = vadd.f32 %v1816_v10, %v3301_v42  ;;  %v1923_v46 = vmax.f32 %v1905_v56, 0.0 }
 0x10d   :  { %v1829_v16 = vadd.f32 %v1825_v8, %v1731_v39  ;;  %v1828_v19 = vmax.f32 %v1822_v5, 0.0  ;;  %v1915_v44 = vadd.f32 %v1914_v62, %v3301_v42  ;;  %vm193_vm6 = vcmp.eq.s32.totalorder %v3171_v61, 0 }
 0x10e   :  { %vm196_vm7 = vcmp.eq.s32.totalorder %v3171_v61, 2  ;;  %v1733_v29 = vadd.f32 %v1729_v57, %v1635_v40  ;;  %v1928_v1 = vadd.f32 %v1924_v52, %v1830_v59  ;;  %v1827_v32 = vmax.f32 %v1817_v27, 0.0 }
 0x10f   :  { %v2008_v20 = vadd.f32 %v2505_v18, %v3180_v15  ;;  %vm192_vm8 = vcmp.lt.s32.totalorder %v3171_v61, 2  ;;  %v1832_v54 = vadd.f32 %v1828_v19, %v1734_v55  ;;  %v1926_v10 = vmax.f32 %v1920_v24, 0.0 }
 0x110   :  { %v1925_v9 = vmax.f32 %v1915_v44, 0.0  ;;  %v2106_v41 = vadd.f32 %v2515_v30, %v3180_v15  ;;  %vm189_vm9 = vweird.f32 %v2984_v2  ;;  %vm297_vm10 = vcmp.eq.s32.totalorder %v3160_v58, 0 }
 0x111   :  { %v1831_v62 = vadd.f32 %v1827_v32, %v1733_v29  ;;  %v2022_v0 = vmax.f32 %v2008_v20, 0.0  ;;  %v2003_v33 = vadd.f32 %v2002_v11, %v3253_v28  ;;  %v2101_v6 = vadd.f32 %v2100_v26, %v3253_v28 }
 0x112   :  { %v1927_v18 = vadd.f32 %v1923_v46, %v1829_v16  ;;  %v1930_v47 = vadd.f32 %v1926_v10, %v1832_v54  ;;  %v2018_v60 = vadd.f32 %v2508_v49, %v3299_v25  ;;  %v2116_v38 = vadd.f32 %v2518_v48, %v3299_v25 }
 0x113   :  { %v1929_v50 = vadd.f32 %v1925_v9, %v1831_v62  ;;  %v2026_v15 = vadd.f32 %v2022_v0, %v1928_v1  ;;  %v2120_v30 = vmax.f32 %v2106_v41, 0.0  ;;  %v2021_v34 = vmax.f32 %v2003_v33, 0.0  ;;  %v2561_v17 = vpop.eup %2560 }
 0x114   :  { %vm296_vm11 = vcmp.lt.s32.totalorder %v3160_v58, 2  ;;  %v2119_v37 = vmax.f32 %v2101_v6, 0.0  ;;  %v2024_v45 = vmax.f32 %v2018_v60, 0.0  ;;  %v2013_v11 = vadd.f32 %v2012_v22, %v3301_v42  ;;  %v2563_v26 = vpop.eup %2562 }
 0x115   :  { %v2111_v28 = vadd.f32 %v2110_v43, %v3301_v42  ;;  %vm293_vm12 = vweird.f32 %v2982_v63  ;;  %v2124_v53 = vadd.f32 %v2120_v30, %v2026_v15  ;;  %v2025_v51 = vadd.f32 %v2021_v34, %v1927_v18 }
 0x116   :  { %v194_v25 = vxor.u32 2147483648, %v3353_v14  ;;  %v197_v39 = vxor.u32 2147483648, %v3341_v21  ;;  %v2028_v55 = vadd.f32 %v2024_v45, %v1930_v47  ;;  %v2122_v31 = vmax.f32 %v2116_v38, 0.0 }
 0x117   :  { %v2023_v56 = vmax.f32 %v2013_v11, 0.0  ;;  %v298_v40 = vxor.u32 2147483648, %v3303_v4  ;;  %v2128_v57 = vmul.f32 0.0625, %v2124_v53  ;;  %v2123_v8 = vadd.f32 %v2119_v37, %v2025_v51 }
 0x118   :  { %v195_v42 = vsel %vm193_vm6, %v3341_v21, %v194_v25  ;;  %v198_v5 = vsel %vm196_vm7, %v197_v39, %v3353_v14  ;;  %v2126_v59 = vadd.f32 %v2122_v31, %v2028_v55  ;;  %v2121_v24 = vmax.f32 %v2111_v28, 0.0 }
 0x119   :  { %v2027_v52 = vadd.f32 %v2023_v56, %v1929_v50  ;;  %v199_v27 = vsel %vm192_vm8, %v195_v42, %v198_v5  ;;  %2132 = vst [vmem:[#allocation5 + $0x8] sm:$0xff] %v2128_v57  ;;  %v2127_v49 = vmul.f32 0.0625, %v2123_v8  ;;  %v299_v16 = vsel %vm297_vm10, %v3292_v7, %v298_v40 }
 0x11a   :  { %v200_v48 = vsel %vm189_vm9, nan, %v199_v27  ;;  %v301_v21 = vxor.u32 2147483648, %v3292_v7  ;;  %v503_v14 = vand.u32 3, %v3247_v3  ;;  %v2130_v46 = vmul.f32 0.0625, %v2126_v59 }
 0x11b   :  { %v2125_v19 = vadd.f32 %v2121_v24, %v2027_v52  ;;  %vm300_vm13 = vcmp.eq.s32.totalorder %v3160_v58, 2  ;;  %513 = vst [vmem:[#allocation3] sm:$0xff] %v200_v48  ;;  %2131 = vst [vmem:[#allocation5] sm:$0xff] %v2127_v49  ;;  %vm400_vm14 = vcmp.lt.s32.totalorder %v3404_v12, 2  ;;  %v402_v2 = vxor.u32 2147483648, %v2563_v26 }
 0x11c   :  { %v302_v61 = vsel %vm300_vm13, %v301_v21, %v3303_v4  ;;  %v405_v44 = vxor.u32 2147483648, %v2561_v17  ;;  %2134 = vst [vmem:[#allocation5 + $0x18] sm:$0xff] %v2130_v46  ;;  %vm401_vm15 = vcmp.eq.s32.totalorder %v3404_v12, 0  ;;  %vm404_vm1 = vcmp.eq.s32.totalorder %v3404_v12, 2 }
 0x11d   :  { %v2129_v29 = vmul.f32 0.0625, %v2125_v19  ;;  %v303_v7 = vsel %vm296_vm11, %v299_v16, %v302_v61  ;;  %v403_v1 = vsel %vm401_vm15, %v2561_v17, %v402_v2  ;;  %v506_v4 = vxor.u32 2147483648, %v3454_v35 }
 0x11e   :  { %v304_v3 = vsel %vm293_vm12, nan, %v303_v7  ;;  %v406_v32 = vsel %vm404_vm1, %v405_v44, %v2563_v26  ;;  %vm397_vm0 = vweird.f32 %v2998_v23  ;;  %vm505_vm2 = vcmp.eq.s32.totalorder %v503_v14, 0 }
 0x11f   :  { %2133 = vst [vmem:[#allocation5 + $0x10] sm:$0xff] %v2129_v29  ;;  %v407_v20 = vsel %vm400_vm14, %v403_v1, %v406_v32  ;;  %v509_v58 = vxor.u32 2147483648, %v3448_v36  ;;  %514 = vst [vmem:[#allocation3 + $0x8] sm:$0xff] %v304_v3  ;;  %v507_v12 = vsel %vm505_vm2, %v3448_v36, %v506_v4  ;;  %vm508_vm3 = vcmp.eq.s32.totalorder %v503_v14, 2 }
 0x120   :  { %v408_v54 = vsel %vm397_vm0, nan, %v407_v20 }
 0x121   :  { %2575 = shalt.err (!%p2572_p4)
}
 0x122   :  { %s2617_s2 = smov 128   ;;  %s2618_s9 = smov 8   ;;  %vm504_vm4 = vcmp.lt.s32.totalorder %v503_v14, 2  ;;  %v510_v63 = vsel %vm508_vm3, %v509_v58, %v3454_v35  ;;  %515 = vst [vmem:[#allocation3 + $0x10] sm:$0xff] %v408_v54  ;;  %vm501_vm5 = vweird.f32 %v2994_v13 }
 0x123   :  { %2158 = dma.vmem_to_hbm [thread:$0]  %s2153_s1, 512, %s3564_s8, [#allocation6], %s2617_s2, %s2617_s2, %s2618_s9   ;;  %v511_v23 = vsel %vm504_vm4, %v507_v12, %v510_v63 }
 0x124   :  { %v512_v36 = vsel %vm501_vm5, nan, %v511_v23  ;;  %s2584_s12 = scalar_lea.vmem %s2141_s29, 512  ;;  %p2589_p6 = scmp.lt.s32.totalorder %s2141_s29, %s2141_s29 }
 0x125   :  { %516 = vst [vmem:[#allocation3 + $0x18] sm:$0xff] %v512_v36  ;;  %p2585_p5 = scmp.ne.s32.totalorder %s2141_s29, %s2584_s12  ;;  %p2590_p7 = scmp.lt.s32.totalorder %s2584_s12, %s2584_s12 }
 0x127   :  { %p2591_p8 = por %p2590_p7, %p2589_p6 }
 0x129   :  { %p2592_p9 = pnand %p2591_p8, %p2585_p5 }
 0x12b   :  { %2595 = shalt.err (!%p2592_p9)
}
 0x12c   :  { %2146 = dma.vmem_to_hbm [thread:$0]  %s2141_s29, 512, %s3563_s7, [#allocation4], %s2617_s2, %s2617_s2, %s2618_s9  }
 0x12d   :  { %2604 = dma.done.wait [#allocation4], 512  }
 0x12e   :  { %2605 = vsyncadd [#allocation4], 4294966784 }
 0x12f   :  { %2606 = dma.done.wait [#allocation6], 512  }
 0x130   :  { %2607 = vsyncadd [#allocation6], 4294966784 }
 0x131   :  { %2165 = vsyncpa [#allocation4], 1 }
 0x132   :  { %2166 = vsyncpa [#allocation6], 1 }

</bundles_post_ra>
